<compile_context>
chip_gen: v5e
topology: v5e:2x2
jax: 0.10.0
libtpu: 0.0.40
codegen_flags: <defaults>
</compile_context>

<pallas_src>
import functools
import numpy as np
import jax
import jax.numpy as jnp
from jax.experimental import pallas as pl
from jax.experimental.pallas import tpu as pltpu

D_IN = 40
D_MODEL = 80
N_HEAD = 2
HEAD_DIM = D_MODEL // N_HEAD          # 40
HEAD_PAD = 128                        # lane-aligned per-head chunk width
D_FF = 256
N_SPEAKERS = 600
N_OUT_PAD = 640                       # 5 * 128 -> lane-dense output block
LN_EPS = 1e-5


def _layer_norm(z, g, b):
    mu = jnp.mean(z, axis=-1, keepdims=True)
    var = jnp.mean((z - mu) ** 2, axis=-1, keepdims=True)
    return (z - mu) * jax.lax.rsqrt(var + LN_EPS) * g + b


def dnn_kernel(tb, seq,
               x_ref,                                   # (tb*seq, 40) bf16
               prewT_ref, preb_ref,                     # (40,80) bf16, (1,80) f32
               qkvwT_ref, qkvb_ref,                     # (80,768) bf16, (1,768) f32
               wo0_ref, wo1_ref, outb_ref,              # (128,80) bf16 x2, (1,80) f32
               g1_ref, bt1_ref,                         # (1,80), (1,80) f32
               l1wT_ref, l1b_ref,                       # (80,256) bf16, (1,256) f32
               l2wT_ref, l2b_ref,                       # (256,80) bf16, (1,80) f32
               g2_ref, bt2_ref,                         # (1,80), (1,80) f32
               p1wT_ref, p1b_ref,                       # (80,80) bf16, (1,80) f32
               p2wT_ref, p2b_ref,                       # (80,640) bf16, (1,640) f32
               o_ref):                                  # (tb, 640) f32
    m = tb * seq
    xf = x_ref[...]                                     # (m, 40) bf16

    # ---- pre_net: Linear(40, 80), f32 accumulate ----
    h = jnp.dot(xf, prewT_ref[...], preferred_element_type=jnp.float32) + preb_ref[...]
    h_bf = h.astype(jnp.bfloat16)

    # ---- fused QKV: (m,80) @ (80,768); 128-aligned head chunks, scale folded in Q ----
    qkv = jnp.dot(h_bf, qkvwT_ref[...], preferred_element_type=jnp.float32) + qkvb_ref[...]
    qkv = qkv.reshape(tb, seq, 3 * N_HEAD * HEAD_PAD)

    def one_head(i):
        qh = qkv[:, :, i * HEAD_PAD:(i + 1) * HEAD_PAD].astype(jnp.bfloat16)
        kh = qkv[:, :, (N_HEAD + i) * HEAD_PAD:
                       (N_HEAD + i + 1) * HEAD_PAD].astype(jnp.bfloat16)
        vh = qkv[:, :, (2 * N_HEAD + i) * HEAD_PAD:
                       (2 * N_HEAD + i + 1) * HEAD_PAD].astype(jnp.bfloat16)
        s = jnp.einsum("bsd,btd->bst", qh, kh,
                       preferred_element_type=jnp.float32)               # (tb, S, S)
        s = s - jnp.max(s, axis=-1, keepdims=True)
        e = jnp.exp(s)
        p = e * pl.reciprocal(jnp.sum(e, axis=-1, keepdims=True), approx=True)
        o = jnp.einsum("bst,btd->bsd", p.astype(jnp.bfloat16), vh,
                       preferred_element_type=jnp.float32)               # (tb, S, 128)
        return o.reshape(m, HEAD_PAD).astype(jnp.bfloat16)

    o0 = one_head(0)
    o1 = one_head(1)

    # out_proj split per head; padded rows of wo* are zero, so result is exact.
    attn = (jnp.dot(o0, wo0_ref[...], preferred_element_type=jnp.float32)
            + jnp.dot(o1, wo1_ref[...], preferred_element_type=jnp.float32)
            + outb_ref[...])

    # residual + layernorm1 (post-norm, PyTorch default norm_first=False)
    h1 = _layer_norm(h + attn, g1_ref[...], bt1_ref[...])

    # ---- feed-forward: Linear(80,256) -> ReLU -> Linear(256,80) ----
    ff = jnp.dot(h1.astype(jnp.bfloat16), l1wT_ref[...],
                 preferred_element_type=jnp.float32) + l1b_ref[...]
    ff = jnp.maximum(ff, 0.0).astype(jnp.bfloat16)
    ff = jnp.dot(ff, l2wT_ref[...], preferred_element_type=jnp.float32) + l2b_ref[...]

    # residual + layernorm2
    h2 = _layer_norm(h1 + ff, g2_ref[...], bt2_ref[...])

    # ---- mean pool over sequence: 1/S is folded into p1wT, so just sum ----
    stats = jnp.sum(h2.reshape(tb, seq, D_MODEL), axis=1).astype(jnp.bfloat16)  # (tb, 80)

    # ---- pred_layer: Linear(80,80) -> ReLU -> Linear(80,640 padded) ----
    p = jnp.dot(stats, p1wT_ref[...], preferred_element_type=jnp.float32) + p1b_ref[...]
    p = jnp.maximum(p, 0.0).astype(jnp.bfloat16)
    o_ref[...] = jnp.dot(p, p2wT_ref[...], preferred_element_type=jnp.float32) + p2b_ref[...]


def _split_pad_head_cols(w):
    """(rows, 80) -> (rows, 256): each 40-wide head chunk zero-padded to 128 lanes."""
    h0 = jnp.pad(w[:, :HEAD_DIM], ((0, 0), (0, HEAD_PAD - HEAD_DIM)))
    h1 = jnp.pad(w[:, HEAD_DIM:], ((0, 0), (0, HEAD_PAD - HEAD_DIM)))
    return jnp.concatenate([h0, h1], axis=1)


def dnn_forward(x, params, *, tb=None):
    (prew, preb, inw, inb, outw, outb, g1, bt1,
     l1w, l1b, l2w, l2b, g2, bt2, pw1, pb1, pw2, pb2) = params

    B, S, _ = x.shape

    if tb is None:
        tb = min(128, B)                       # large block: M = tb*S up to 1024 rows
        if B >= 64:
            # ensure >= 2 grid steps so v7x's two TensorCores both get work
            tb = min(tb, ((B + 15) // 16) * 8)  # ~B/2 rounded to a multiple of 8
    B_pad = ((B + tb - 1) // tb) * tb
    if B_pad != B:
        x = jnp.pad(x, ((0, B_pad - B), (0, 0), (0, 0)))

    # ---- host-side layout plumbing -------------------------------------------
    scale = 1.0 / np.sqrt(float(HEAD_DIM))
    inwT = inw.T                                               # (80, 240) cols = [q|k|v]
    qkvwT = jnp.concatenate(
        [_split_pad_head_cols(inwT[:, 0:D_MODEL] * scale),          # q (scaled)
         _split_pad_head_cols(inwT[:, D_MODEL:2 * D_MODEL]),        # k
         _split_pad_head_cols(inwT[:, 2 * D_MODEL:3 * D_MODEL])],   # v
        axis=1)                                                # (80, 768)
    qkvb = jnp.concatenate(
        [_split_pad_head_cols(inb[:, 0:D_MODEL] * scale),
         _split_pad_head_cols(inb[:, D_MODEL:2 * D_MODEL]),
         _split_pad_head_cols(inb[:, 2 * D_MODEL:3 * D_MODEL])],
        axis=1)                                                # (1, 768)

    outwT = outw.T                                             # (80, 80)
    wo0 = jnp.pad(outwT[:HEAD_DIM, :], ((0, HEAD_PAD - HEAD_DIM), (0, 0)))   # (128, 80)
    wo1 = jnp.pad(outwT[HEAD_DIM:, :], ((0, HEAD_PAD - HEAD_DIM), (0, 0)))   # (128, 80)

    p1wT = pw1.T * (1.0 / float(S))                            # fold 1/S mean pool
    p2wT = jnp.pad(pw2.T, ((0, 0), (0, N_OUT_PAD - N_SPEAKERS)))             # (80, 640)
    p2b = jnp.pad(pb2, ((0, 0), (0, N_OUT_PAD - N_SPEAKERS)))                # (1, 640)

    bf16 = jnp.bfloat16
    weights = [
        prew.T.astype(bf16), preb,             # (40,80),  (1,80)
        qkvwT.astype(bf16), qkvb,              # (80,768), (1,768)
        wo0.astype(bf16), wo1.astype(bf16), outb,
        g1, bt1,
        l1w.T.astype(bf16), l1b,               # (80,256), (1,256)
        l2w.T.astype(bf16), l2b,               # (256,80), (1,80)
        g2, bt2,
        p1wT.astype(bf16), pb1,                # (80,80),  (1,80)
        p2wT.astype(bf16), p2b,                # (80,640), (1,640)
    ]

    # flatten x on the host -> (B_pad*S, 40); block is the matmul LHS directly
    x_flat = x.reshape(B_pad * S, D_IN).astype(bf16)

    def const_spec(shape):
        zeros = (0,) * len(shape)
        return pl.BlockSpec(shape, lambda b, _z=zeros: _z)

    weight_specs = [const_spec(w.shape) for w in weights]

    kernel = functools.partial(dnn_kernel, tb, S)

    out = pl.pallas_call(
        kernel,
        out_shape=jax.ShapeDtypeStruct((B_pad, N_OUT_PAD), jnp.float32),
        grid_spec=pltpu.PrefetchScalarGridSpec(
            num_scalar_prefetch=0,
            grid=(B_pad // tb,),
            in_specs=[pl.BlockSpec((tb * S, D_IN), lambda b: (b, 0))] + weight_specs,
            out_specs=pl.BlockSpec((tb, N_OUT_PAD), lambda b: (b, 0)),
        ),
        compiler_params=pltpu.CompilerParams(
            dimension_semantics=("parallel",),
            vmem_limit_bytes=48 * 1024 * 1024,   # above 16/32 MiB defaults, < v7x 64 MiB
        ),
    )(x_flat, *weights)

    return out[:B, :N_SPEAKERS]


def reference_forward(x, params):
    (prew, preb, inw, inb, outw, outb, g1, bt1,
     l1w, l1b, l2w, l2b, g2, bt2, pw1, pb1, pw2, pb2) = params

    def ln(z, g, b):
        mu = jnp.mean(z, -1, keepdims=True)
        var = jnp.mean((z - mu) ** 2, -1, keepdims=True)
        return (z - mu) / jnp.sqrt(var + LN_EPS) * g + b

    h = x @ prew.T + preb                                            # (B, S, 80)
    q = h @ inw[0:80].T + inb[:, 0:80]
    k = h @ inw[80:160].T + inb[:, 80:160]
    v = h @ inw[160:240].T + inb[:, 160:240]
    scale = 1.0 / np.sqrt(float(HEAD_DIM))

    def head(qh, kh, vh):
        s = jnp.einsum("bsd,btd->bst", qh, kh) * scale
        p = jax.nn.softmax(s, axis=-1)
        return jnp.einsum("bst,btd->bsd", p, vh)

    attn = jnp.concatenate(
        [head(q[..., :40], k[..., :40], v[..., :40]),
         head(q[..., 40:], k[..., 40:], v[..., 40:])], axis=-1)
    attn = attn @ outw.T + outb
    h = ln(h + attn, g1, bt1)
    ff = jnp.maximum(h @ l1w.T + l1b, 0.0) @ l2w.T + l2b
    h = ln(h + ff, g2, bt2)
    stats = jnp.mean(h, axis=1)                                      # (B, 80)
    p = jnp.maximum(stats @ pw1.T + pb1, 0.0)
    return p @ pw2.T + pb2                                           # (B, 600)


def make_params(key):
    ks = jax.random.split(key, 18)
    s = 0.05

    def w(k, shape):
        return jax.random.normal(k, shape, jnp.float32) * s

    params = [
        w(ks[0], (D_MODEL, D_IN)),         # pre_net.weight
        w(ks[1], (1, D_MODEL)),            # pre_net.bias
        w(ks[2], (3 * D_MODEL, D_MODEL)),  # attn in_proj_weight
        w(ks[3], (1, 3 * D_MODEL)),        # attn in_proj_bias
        w(ks[4], (D_MODEL, D_MODEL)),      # attn out_proj.weight
        w(ks[5], (1, D_MODEL)),            # attn out_proj.bias
        jnp.ones((1, D_MODEL), jnp.float32),    # norm1.weight
        jnp.zeros((1, D_MODEL), jnp.float32),   # norm1.bias
        w(ks[6], (D_FF, D_MODEL)),         # linear1.weight
        w(ks[7], (1, D_FF)),               # linear1.bias
        w(ks[8], (D_MODEL, D_FF)),         # linear2.weight
        w(ks[9], (1, D_MODEL)),            # linear2.bias
        jnp.ones((1, D_MODEL), jnp.float32),    # norm2.weight
        jnp.zeros((1, D_MODEL), jnp.float32),   # norm2.bias
        w(ks[10], (D_MODEL, D_MODEL)),     # pred.0.weight
        w(ks[11], (1, D_MODEL)),           # pred.0.bias
        w(ks[12], (N_SPEAKERS, D_MODEL)),  # pred.2.weight
        w(ks[13], (1, N_SPEAKERS)),        # pred.2.bias
    ]
    return params


if __name__ == "__main__":
    key = jax.random.PRNGKey(0)
    kx, kp = jax.random.split(key)

    B, S = 2, 8
    x = jax.random.normal(kx, (B, S, D_IN), jnp.float32)
    params = make_params(kp)

    out = dnn_forward(x, params)
    out = jax.block_until_ready(out)

    assert out.shape == (B, N_SPEAKERS)
    assert bool(jnp.all(jnp.isfinite(out)))

    ref = reference_forward(x, params)
    np.testing.assert_allclose(np.asarray(out), np.asarray(ref), atol=5e-2, rtol=5e-2)

    print("KERNEL_OK")
</pallas_src>

<mosaic_0001>
module attributes {stable_mosaic.version = 11 : i64} {
  func.func @dnn_kernel(%arg0: i32, %arg1: memref<16x40xbf16, #tpu.memory_space<vmem>>, %arg2: memref<40x80xbf16, #tpu.memory_space<vmem>>, %arg3: memref<1x80xf32, #tpu.memory_space<vmem>>, %arg4: memref<80x768xbf16, #tpu.memory_space<vmem>>, %arg5: memref<1x768xf32, #tpu.memory_space<vmem>>, %arg6: memref<128x80xbf16, #tpu.memory_space<vmem>>, %arg7: memref<128x80xbf16, #tpu.memory_space<vmem>>, %arg8: memref<1x80xf32, #tpu.memory_space<vmem>>, %arg9: memref<1x80xf32, #tpu.memory_space<vmem>>, %arg10: memref<1x80xf32, #tpu.memory_space<vmem>>, %arg11: memref<80x256xbf16, #tpu.memory_space<vmem>>, %arg12: memref<1x256xf32, #tpu.memory_space<vmem>>, %arg13: memref<256x80xbf16, #tpu.memory_space<vmem>>, %arg14: memref<1x80xf32, #tpu.memory_space<vmem>>, %arg15: memref<1x80xf32, #tpu.memory_space<vmem>>, %arg16: memref<1x80xf32, #tpu.memory_space<vmem>>, %arg17: memref<80x80xbf16, #tpu.memory_space<vmem>>, %arg18: memref<1x80xf32, #tpu.memory_space<vmem>>, %arg19: memref<80x640xbf16, #tpu.memory_space<vmem>>, %arg20: memref<1x640xf32, #tpu.memory_space<vmem>>, %arg21: memref<2x640xf32, #tpu.memory_space<vmem>>) attributes {dimension_semantics = [#tpu.dimension_semantics<parallel>], iteration_bounds = array<i64: 1>, scalar_prefetch = 0 : i64, scratch_operands = 0 : i64, tpu.core_type = #tpu.core_type<tc>, window_params = [{transform_indices = @transform_0, window_bounds = array<i64: 16, 40>}, {pipeline_mode = #tpu.pipeline_mode<synchronous>, transform_indices = @transform_1, window_bounds = array<i64: 40, 80>}, {pipeline_mode = #tpu.pipeline_mode<synchronous>, transform_indices = @transform_2, window_bounds = array<i64: 1, 80>}, {pipeline_mode = #tpu.pipeline_mode<synchronous>, transform_indices = @transform_3, window_bounds = array<i64: 80, 768>}, {pipeline_mode = #tpu.pipeline_mode<synchronous>, transform_indices = @transform_4, window_bounds = array<i64: 1, 768>}, {pipeline_mode = #tpu.pipeline_mode<synchronous>, transform_indices = @transform_5, window_bounds = array<i64: 128, 80>}, {pipeline_mode = #tpu.pipeline_mode<synchronous>, transform_indices = @transform_6, window_bounds = array<i64: 128, 80>}, {pipeline_mode = #tpu.pipeline_mode<synchronous>, transform_indices = @transform_7, window_bounds = array<i64: 1, 80>}, {pipeline_mode = #tpu.pipeline_mode<synchronous>, transform_indices = @transform_8, window_bounds = array<i64: 1, 80>}, {pipeline_mode = #tpu.pipeline_mode<synchronous>, transform_indices = @transform_9, window_bounds = array<i64: 1, 80>}, {pipeline_mode = #tpu.pipeline_mode<synchronous>, transform_indices = @transform_10, window_bounds = array<i64: 80, 256>}, {pipeline_mode = #tpu.pipeline_mode<synchronous>, transform_indices = @transform_11, window_bounds = array<i64: 1, 256>}, {pipeline_mode = #tpu.pipeline_mode<synchronous>, transform_indices = @transform_12, window_bounds = array<i64: 256, 80>}, {pipeline_mode = #tpu.pipeline_mode<synchronous>, transform_indices = @transform_13, window_bounds = array<i64: 1, 80>}, {pipeline_mode = #tpu.pipeline_mode<synchronous>, transform_indices = @transform_14, window_bounds = array<i64: 1, 80>}, {pipeline_mode = #tpu.pipeline_mode<synchronous>, transform_indices = @transform_15, window_bounds = array<i64: 1, 80>}, {pipeline_mode = #tpu.pipeline_mode<synchronous>, transform_indices = @transform_16, window_bounds = array<i64: 80, 80>}, {pipeline_mode = #tpu.pipeline_mode<synchronous>, transform_indices = @transform_17, window_bounds = array<i64: 1, 80>}, {pipeline_mode = #tpu.pipeline_mode<synchronous>, transform_indices = @transform_18, window_bounds = array<i64: 80, 640>}, {pipeline_mode = #tpu.pipeline_mode<synchronous>, transform_indices = @transform_19, window_bounds = array<i64: 1, 640>}, {transform_indices = @transform_20, window_bounds = array<i64: 2, 640>}]} {
    %c0 = arith.constant 0 : index
    %c0_0 = arith.constant 0 : index
    %0 = vector.load %arg1[%c0, %c0_0] : memref<16x40xbf16, #tpu.memory_space<vmem>>, vector<16x40xbf16>
    %c0_1 = arith.constant 0 : index
    %c0_2 = arith.constant 0 : index
    %1 = vector.load %arg2[%c0_1, %c0_2] : memref<40x80xbf16, #tpu.memory_space<vmem>>, vector<40x80xbf16>
    %cst = arith.constant dense<0.000000e+00> : vector<16x80xf32>
    %2 = tpu.matmul %0, %1, %cst {dimension_numbers = #tpu.dot_dimension_numbers<[1], [0], [0], [1], [0, 0, 1, 1], [], []>} : vector<16x40xbf16>, vector<40x80xbf16>, vector<16x80xf32> -> vector<16x80xf32>
    %c0_3 = arith.constant 0 : index
    %c0_4 = arith.constant 0 : index
    %3 = vector.load %arg3[%c0_3, %c0_4] : memref<1x80xf32, #tpu.memory_space<vmem>>, vector<1x80xf32>
    %4 = vector.broadcast %3 : vector<1x80xf32> to vector<16x80xf32>
    %5 = arith.addf %2, %4 : vector<16x80xf32>
    %6 = arith.truncf %5 : vector<16x80xf32> to vector<16x80xbf16>
    %c0_5 = arith.constant 0 : index
    %c0_6 = arith.constant 0 : index
    %7 = vector.load %arg4[%c0_5, %c0_6] : memref<80x768xbf16, #tpu.memory_space<vmem>>, vector<80x768xbf16>
    %cst_7 = arith.constant dense<0.000000e+00> : vector<16x768xf32>
    %8 = tpu.matmul %6, %7, %cst_7 {dimension_numbers = #tpu.dot_dimension_numbers<[1], [0], [0], [1], [0, 0, 1, 1], [], []>} : vector<16x80xbf16>, vector<80x768xbf16>, vector<16x768xf32> -> vector<16x768xf32>
    %c0_8 = arith.constant 0 : index
    %c0_9 = arith.constant 0 : index
    %9 = vector.load %arg5[%c0_8, %c0_9] : memref<1x768xf32, #tpu.memory_space<vmem>>, vector<1x768xf32>
    %10 = vector.broadcast %9 : vector<1x768xf32> to vector<16x768xf32>
    %11 = arith.addf %8, %10 : vector<16x768xf32>
    %12 = vector.shape_cast %11 : vector<16x768xf32> to vector<2x8x768xf32>
    %13 = vector.extract_strided_slice %12 {offsets = [0, 0, 0], sizes = [2, 8, 128], strides = [1, 1, 1]} : vector<2x8x768xf32> to vector<2x8x128xf32>
    %14 = arith.truncf %13 : vector<2x8x128xf32> to vector<2x8x128xbf16>
    %15 = vector.extract_strided_slice %12 {offsets = [0, 0, 256], sizes = [2, 8, 128], strides = [1, 1, 1]} : vector<2x8x768xf32> to vector<2x8x128xf32>
    %16 = arith.truncf %15 : vector<2x8x128xf32> to vector<2x8x128xbf16>
    %17 = vector.extract_strided_slice %12 {offsets = [0, 0, 512], sizes = [2, 8, 128], strides = [1, 1, 1]} : vector<2x8x768xf32> to vector<2x8x128xf32>
    %18 = arith.truncf %17 : vector<2x8x128xf32> to vector<2x8x128xbf16>
    "tpu.trace_start"() <{level = 10 : i32, message = "bsd,btd->bst"}> : () -> ()
    %cst_10 = arith.constant dense<0.000000e+00> : vector<2x8x8xf32>
    %19 = tpu.matmul %14, %16, %cst_10 {dimension_numbers = #tpu.dot_dimension_numbers<[2], [2], [1], [1], [0, 0, 0, 1, 1, 1], [0], [0]>} : vector<2x8x128xbf16>, vector<2x8x128xbf16>, vector<2x8x8xf32> -> vector<2x8x8xf32>
    "tpu.trace_stop"() : () -> ()
    %cst_11 = arith.constant dense<0xFF800000> : vector<2x8xf32>
    %20 = vector.multi_reduction <maximumf>, %19, %cst_11 [2] : vector<2x8x8xf32> to vector<2x8xf32>
    %21 = vector.shape_cast %20 : vector<2x8xf32> to vector<2x8x1xf32>
    %22 = vector.broadcast %21 : vector<2x8x1xf32> to vector<2x8x8xf32>
    %23 = arith.subf %19, %22 : vector<2x8x8xf32>
    %24 = math.exp %23 : vector<2x8x8xf32>
    %cst_12 = arith.constant dense<0.000000e+00> : vector<2x8xf32>
    %25 = vector.multi_reduction <add>, %24, %cst_12 [2] : vector<2x8x8xf32> to vector<2x8xf32>
    %26 = vector.shape_cast %25 : vector<2x8xf32> to vector<2x8x1xf32>
    %27 = tpu.reciprocal %26 {approx = true} : vector<2x8x1xf32> -> vector<2x8x1xf32>
    %28 = vector.broadcast %27 : vector<2x8x1xf32> to vector<2x8x8xf32>
    %29 = arith.mulf %24, %28 : vector<2x8x8xf32>
    %30 = arith.truncf %29 : vector<2x8x8xf32> to vector<2x8x8xbf16>
    "tpu.trace_start"() <{level = 10 : i32, message = "bst,btd->bsd"}> : () -> ()
    %cst_13 = arith.constant dense<0.000000e+00> : vector<2x8x128xf32>
    %31 = tpu.matmul %30, %18, %cst_13 {dimension_numbers = #tpu.dot_dimension_numbers<[2], [1], [1], [2], [0, 0, 0, 1, 1, 2], [0], [0]>} : vector<2x8x8xbf16>, vector<2x8x128xbf16>, vector<2x8x128xf32> -> vector<2x8x128xf32>
    "tpu.trace_stop"() : () -> ()
    %32 = vector.shape_cast %31 : vector<2x8x128xf32> to vector<16x128xf32>
    %33 = arith.truncf %32 : vector<16x128xf32> to vector<16x128xbf16>
    %34 = vector.extract_strided_slice %12 {offsets = [0, 0, 128], sizes = [2, 8, 128], strides = [1, 1, 1]} : vector<2x8x768xf32> to vector<2x8x128xf32>
    %35 = arith.truncf %34 : vector<2x8x128xf32> to vector<2x8x128xbf16>
    %36 = vector.extract_strided_slice %12 {offsets = [0, 0, 384], sizes = [2, 8, 128], strides = [1, 1, 1]} : vector<2x8x768xf32> to vector<2x8x128xf32>
    %37 = arith.truncf %36 : vector<2x8x128xf32> to vector<2x8x128xbf16>
    %38 = vector.extract_strided_slice %12 {offsets = [0, 0, 640], sizes = [2, 8, 128], strides = [1, 1, 1]} : vector<2x8x768xf32> to vector<2x8x128xf32>
    %39 = arith.truncf %38 : vector<2x8x128xf32> to vector<2x8x128xbf16>
    "tpu.trace_start"() <{level = 10 : i32, message = "bsd,btd->bst"}> : () -> ()
    %cst_14 = arith.constant dense<0.000000e+00> : vector<2x8x8xf32>
    %40 = tpu.matmul %35, %37, %cst_14 {dimension_numbers = #tpu.dot_dimension_numbers<[2], [2], [1], [1], [0, 0, 0, 1, 1, 1], [0], [0]>} : vector<2x8x128xbf16>, vector<2x8x128xbf16>, vector<2x8x8xf32> -> vector<2x8x8xf32>
    "tpu.trace_stop"() : () -> ()
    %cst_15 = arith.constant dense<0xFF800000> : vector<2x8xf32>
    %41 = vector.multi_reduction <maximumf>, %40, %cst_15 [2] : vector<2x8x8xf32> to vector<2x8xf32>
    %42 = vector.shape_cast %41 : vector<2x8xf32> to vector<2x8x1xf32>
    %43 = vector.broadcast %42 : vector<2x8x1xf32> to vector<2x8x8xf32>
    %44 = arith.subf %40, %43 : vector<2x8x8xf32>
    %45 = math.exp %44 : vector<2x8x8xf32>
    %cst_16 = arith.constant dense<0.000000e+00> : vector<2x8xf32>
    %46 = vector.multi_reduction <add>, %45, %cst_16 [2] : vector<2x8x8xf32> to vector<2x8xf32>
    %47 = vector.shape_cast %46 : vector<2x8xf32> to vector<2x8x1xf32>
    %48 = tpu.reciprocal %47 {approx = true} : vector<2x8x1xf32> -> vector<2x8x1xf32>
    %49 = vector.broadcast %48 : vector<2x8x1xf32> to vector<2x8x8xf32>
    %50 = arith.mulf %45, %49 : vector<2x8x8xf32>
    %51 = arith.truncf %50 : vector<2x8x8xf32> to vector<2x8x8xbf16>
    "tpu.trace_start"() <{level = 10 : i32, message = "bst,btd->bsd"}> : () -> ()
    %cst_17 = arith.constant dense<0.000000e+00> : vector<2x8x128xf32>
    %52 = tpu.matmul %51, %39, %cst_17 {dimension_numbers = #tpu.dot_dimension_numbers<[2], [1], [1], [2], [0, 0, 0, 1, 1, 2], [0], [0]>} : vector<2x8x8xbf16>, vector<2x8x128xbf16>, vector<2x8x128xf32> -> vector<2x8x128xf32>
    "tpu.trace_stop"() : () -> ()
    %53 = vector.shape_cast %52 : vector<2x8x128xf32> to vector<16x128xf32>
    %54 = arith.truncf %53 : vector<16x128xf32> to vector<16x128xbf16>
    %c0_18 = arith.constant 0 : index
    %c0_19 = arith.constant 0 : index
    %55 = vector.load %arg6[%c0_18, %c0_19] : memref<128x80xbf16, #tpu.memory_space<vmem>>, vector<128x80xbf16>
    %cst_20 = arith.constant dense<0.000000e+00> : vector<16x80xf32>
    %56 = tpu.matmul %33, %55, %cst_20 {dimension_numbers = #tpu.dot_dimension_numbers<[1], [0], [0], [1], [0, 0, 1, 1], [], []>} : vector<16x128xbf16>, vector<128x80xbf16>, vector<16x80xf32> -> vector<16x80xf32>
    %c0_21 = arith.constant 0 : index
    %c0_22 = arith.constant 0 : index
    %57 = vector.load %arg7[%c0_21, %c0_22] : memref<128x80xbf16, #tpu.memory_space<vmem>>, vector<128x80xbf16>
    %cst_23 = arith.constant dense<0.000000e+00> : vector<16x80xf32>
    %58 = tpu.matmul %54, %57, %cst_23 {dimension_numbers = #tpu.dot_dimension_numbers<[1], [0], [0], [1], [0, 0, 1, 1], [], []>} : vector<16x128xbf16>, vector<128x80xbf16>, vector<16x80xf32> -> vector<16x80xf32>
    %59 = arith.addf %56, %58 : vector<16x80xf32>
    %c0_24 = arith.constant 0 : index
    %c0_25 = arith.constant 0 : index
    %60 = vector.load %arg8[%c0_24, %c0_25] : memref<1x80xf32, #tpu.memory_space<vmem>>, vector<1x80xf32>
    %61 = vector.broadcast %60 : vector<1x80xf32> to vector<16x80xf32>
    %62 = arith.addf %59, %61 : vector<16x80xf32>
    %63 = arith.addf %5, %62 : vector<16x80xf32>
    %c0_26 = arith.constant 0 : index
    %c0_27 = arith.constant 0 : index
    %64 = vector.load %arg9[%c0_26, %c0_27] : memref<1x80xf32, #tpu.memory_space<vmem>>, vector<1x80xf32>
    %c0_28 = arith.constant 0 : index
    %c0_29 = arith.constant 0 : index
    %65 = vector.load %arg10[%c0_28, %c0_29] : memref<1x80xf32, #tpu.memory_space<vmem>>, vector<1x80xf32>
    %cst_30 = arith.constant dense<0.000000e+00> : vector<16xf32>
    %66 = vector.multi_reduction <add>, %63, %cst_30 [1] : vector<16x80xf32> to vector<16xf32>
    %67 = vector.shape_cast %66 : vector<16xf32> to vector<16x1xf32>
    %cst_31 = arith.constant 8.000000e+01 : f32
    %68 = vector.broadcast %cst_31 : f32 to vector<16x1xf32>
    %69 = arith.divf %67, %68 : vector<16x1xf32>
    %70 = vector.broadcast %69 : vector<16x1xf32> to vector<16x80xf32>
    %71 = arith.subf %63, %70 : vector<16x80xf32>
    %72 = arith.mulf %71, %71 : vector<16x80xf32>
    %cst_32 = arith.constant dense<0.000000e+00> : vector<16xf32>
    %73 = vector.multi_reduction <add>, %72, %cst_32 [1] : vector<16x80xf32> to vector<16xf32>
    %74 = vector.shape_cast %73 : vector<16xf32> to vector<16x1xf32>
    %cst_33 = arith.constant 8.000000e+01 : f32
    %75 = vector.broadcast %cst_33 : f32 to vector<16x1xf32>
    %76 = arith.divf %74, %75 : vector<16x1xf32>
    %77 = vector.broadcast %69 : vector<16x1xf32> to vector<16x80xf32>
    %78 = arith.subf %63, %77 : vector<16x80xf32>
    %cst_34 = arith.constant 9.99999974E-6 : f32
    %79 = vector.broadcast %cst_34 : f32 to vector<16x1xf32>
    %80 = arith.addf %76, %79 : vector<16x1xf32>
    %81 = math.rsqrt %80 : vector<16x1xf32>
    %82 = vector.broadcast %81 : vector<16x1xf32> to vector<16x80xf32>
    %83 = arith.mulf %78, %82 : vector<16x80xf32>
    %84 = vector.broadcast %64 : vector<1x80xf32> to vector<16x80xf32>
    %85 = arith.mulf %83, %84 : vector<16x80xf32>
    %86 = vector.broadcast %65 : vector<1x80xf32> to vector<16x80xf32>
    %87 = arith.addf %85, %86 : vector<16x80xf32>
    %88 = arith.truncf %87 : vector<16x80xf32> to vector<16x80xbf16>
    %c0_35 = arith.constant 0 : index
    %c0_36 = arith.constant 0 : index
    %89 = vector.load %arg11[%c0_35, %c0_36] : memref<80x256xbf16, #tpu.memory_space<vmem>>, vector<80x256xbf16>
    %cst_37 = arith.constant dense<0.000000e+00> : vector<16x256xf32>
    %90 = tpu.matmul %88, %89, %cst_37 {dimension_numbers = #tpu.dot_dimension_numbers<[1], [0], [0], [1], [0, 0, 1, 1], [], []>} : vector<16x80xbf16>, vector<80x256xbf16>, vector<16x256xf32> -> vector<16x256xf32>
    %c0_38 = arith.constant 0 : index
    %c0_39 = arith.constant 0 : index
    %91 = vector.load %arg12[%c0_38, %c0_39] : memref<1x256xf32, #tpu.memory_space<vmem>>, vector<1x256xf32>
    %92 = vector.broadcast %91 : vector<1x256xf32> to vector<16x256xf32>
    %93 = arith.addf %90, %92 : vector<16x256xf32>
    %cst_40 = arith.constant 0.000000e+00 : f32
    %94 = vector.broadcast %cst_40 : f32 to vector<16x256xf32>
    %95 = arith.maximumf %93, %94 : vector<16x256xf32>
    %96 = arith.truncf %95 : vector<16x256xf32> to vector<16x256xbf16>
    %c0_41 = arith.constant 0 : index
    %c0_42 = arith.constant 0 : index
    %97 = vector.load %arg13[%c0_41, %c0_42] : memref<256x80xbf16, #tpu.memory_space<vmem>>, vector<256x80xbf16>
    %cst_43 = arith.constant dense<0.000000e+00> : vector<16x80xf32>
    %98 = tpu.matmul %96, %97, %cst_43 {dimension_numbers = #tpu.dot_dimension_numbers<[1], [0], [0], [1], [0, 0, 1, 1], [], []>} : vector<16x256xbf16>, vector<256x80xbf16>, vector<16x80xf32> -> vector<16x80xf32>
    %c0_44 = arith.constant 0 : index
    %c0_45 = arith.constant 0 : index
    %99 = vector.load %arg14[%c0_44, %c0_45] : memref<1x80xf32, #tpu.memory_space<vmem>>, vector<1x80xf32>
    %100 = vector.broadcast %99 : vector<1x80xf32> to vector<16x80xf32>
    %101 = arith.addf %98, %100 : vector<16x80xf32>
    %102 = arith.addf %87, %101 : vector<16x80xf32>
    %c0_46 = arith.constant 0 : index
    %c0_47 = arith.constant 0 : index
    %103 = vector.load %arg15[%c0_46, %c0_47] : memref<1x80xf32, #tpu.memory_space<vmem>>, vector<1x80xf32>
    %c0_48 = arith.constant 0 : index
    %c0_49 = arith.constant 0 : index
    %104 = vector.load %arg16[%c0_48, %c0_49] : memref<1x80xf32, #tpu.memory_space<vmem>>, vector<1x80xf32>
    %cst_50 = arith.constant dense<0.000000e+00> : vector<16xf32>
    %105 = vector.multi_reduction <add>, %102, %cst_50 [1] : vector<16x80xf32> to vector<16xf32>
    %106 = vector.shape_cast %105 : vector<16xf32> to vector<16x1xf32>
    %cst_51 = arith.constant 8.000000e+01 : f32
    %107 = vector.broadcast %cst_51 : f32 to vector<16x1xf32>
    %108 = arith.divf %106, %107 : vector<16x1xf32>
    %109 = vector.broadcast %108 : vector<16x1xf32> to vector<16x80xf32>
    %110 = arith.subf %102, %109 : vector<16x80xf32>
    %111 = arith.mulf %110, %110 : vector<16x80xf32>
    %cst_52 = arith.constant dense<0.000000e+00> : vector<16xf32>
    %112 = vector.multi_reduction <add>, %111, %cst_52 [1] : vector<16x80xf32> to vector<16xf32>
    %113 = vector.shape_cast %112 : vector<16xf32> to vector<16x1xf32>
    %cst_53 = arith.constant 8.000000e+01 : f32
    %114 = vector.broadcast %cst_53 : f32 to vector<16x1xf32>
    %115 = arith.divf %113, %114 : vector<16x1xf32>
    %116 = vector.broadcast %108 : vector<16x1xf32> to vector<16x80xf32>
    %117 = arith.subf %102, %116 : vector<16x80xf32>
    %cst_54 = arith.constant 9.99999974E-6 : f32
    %118 = vector.broadcast %cst_54 : f32 to vector<16x1xf32>
    %119 = arith.addf %115, %118 : vector<16x1xf32>
    %120 = math.rsqrt %119 : vector<16x1xf32>
    %121 = vector.broadcast %120 : vector<16x1xf32> to vector<16x80xf32>
    %122 = arith.mulf %117, %121 : vector<16x80xf32>
    %123 = vector.broadcast %103 : vector<1x80xf32> to vector<16x80xf32>
    %124 = arith.mulf %122, %123 : vector<16x80xf32>
    %125 = vector.broadcast %104 : vector<1x80xf32> to vector<16x80xf32>
    %126 = arith.addf %124, %125 : vector<16x80xf32>
    %127 = vector.shape_cast %126 : vector<16x80xf32> to vector<2x8x80xf32>
    %cst_55 = arith.constant dense<0.000000e+00> : vector<2x80xf32>
    %128 = vector.multi_reduction <add>, %127, %cst_55 [1] : vector<2x8x80xf32> to vector<2x80xf32>
    %129 = arith.truncf %128 : vector<2x80xf32> to vector<2x80xbf16>
    %c0_56 = arith.constant 0 : index
    %c0_57 = arith.constant 0 : index
    %130 = vector.load %arg17[%c0_56, %c0_57] : memref<80x80xbf16, #tpu.memory_space<vmem>>, vector<80x80xbf16>
    %cst_58 = arith.constant dense<0.000000e+00> : vector<2x80xf32>
    %131 = tpu.matmul %129, %130, %cst_58 {dimension_numbers = #tpu.dot_dimension_numbers<[1], [0], [0], [1], [0, 0, 1, 1], [], []>} : vector<2x80xbf16>, vector<80x80xbf16>, vector<2x80xf32> -> vector<2x80xf32>
    %c0_59 = arith.constant 0 : index
    %c0_60 = arith.constant 0 : index
    %132 = vector.load %arg18[%c0_59, %c0_60] : memref<1x80xf32, #tpu.memory_space<vmem>>, vector<1x80xf32>
    %133 = vector.broadcast %132 : vector<1x80xf32> to vector<2x80xf32>
    %134 = arith.addf %131, %133 : vector<2x80xf32>
    %cst_61 = arith.constant 0.000000e+00 : f32
    %135 = vector.broadcast %cst_61 : f32 to vector<2x80xf32>
    %136 = arith.maximumf %134, %135 : vector<2x80xf32>
    %137 = arith.truncf %136 : vector<2x80xf32> to vector<2x80xbf16>
    %c0_62 = arith.constant 0 : index
    %c0_63 = arith.constant 0 : index
    %138 = vector.load %arg19[%c0_62, %c0_63] : memref<80x640xbf16, #tpu.memory_space<vmem>>, vector<80x640xbf16>
    %cst_64 = arith.constant dense<0.000000e+00> : vector<2x640xf32>
    %139 = tpu.matmul %137, %138, %cst_64 {dimension_numbers = #tpu.dot_dimension_numbers<[1], [0], [0], [1], [0, 0, 1, 1], [], []>} : vector<2x80xbf16>, vector<80x640xbf16>, vector<2x640xf32> -> vector<2x640xf32>
    %c0_65 = arith.constant 0 : index
    %c0_66 = arith.constant 0 : index
    %140 = vector.load %arg20[%c0_65, %c0_66] : memref<1x640xf32, #tpu.memory_space<vmem>>, vector<1x640xf32>
    %141 = vector.broadcast %140 : vector<1x640xf32> to vector<2x640xf32>
    %142 = arith.addf %139, %141 : vector<2x640xf32>
    %c0_67 = arith.constant 0 : index
    %c0_68 = arith.constant 0 : index
    %143 = vector.load %arg21[%c0_67, %c0_68] : memref<2x640xf32, #tpu.memory_space<vmem>>, vector<2x640xf32>
    tpu.vector_store %arg21[%c0_67, %c0_68], %142 {strides = array<i32>} : memref<2x640xf32, #tpu.memory_space<vmem>>, vector<2x640xf32>,
    return
  }
  func.func @transform_0(%arg0: i32) -> (i32, i32) {
    %c0_i32 = arith.constant 0 : i32
    %c0_i32_0 = arith.constant 0 : i32
    return %arg0, %c0_i32 : i32, i32
  }
  func.func @transform_1(%arg0: i32) -> (i32, i32) {
    %c0_i32 = arith.constant 0 : i32
    %c0_i32_0 = arith.constant 0 : i32
    %c0_i32_1 = arith.constant 0 : i32
    return %c0_i32, %c0_i32_0 : i32, i32
  }
  func.func @transform_2(%arg0: i32) -> (i32, i32) {
    %c0_i32 = arith.constant 0 : i32
    %c0_i32_0 = arith.constant 0 : i32
    %c0_i32_1 = arith.constant 0 : i32
    return %c0_i32, %c0_i32_0 : i32, i32
  }
  func.func @transform_3(%arg0: i32) -> (i32, i32) {
    %c0_i32 = arith.constant 0 : i32
    %c0_i32_0 = arith.constant 0 : i32
    %c0_i32_1 = arith.constant 0 : i32
    return %c0_i32, %c0_i32_0 : i32, i32
  }
  func.func @transform_4(%arg0: i32) -> (i32, i32) {
    %c0_i32 = arith.constant 0 : i32
    %c0_i32_0 = arith.constant 0 : i32
    %c0_i32_1 = arith.constant 0 : i32
    return %c0_i32, %c0_i32_0 : i32, i32
  }
  func.func @transform_5(%arg0: i32) -> (i32, i32) {
    %c0_i32 = arith.constant 0 : i32
    %c0_i32_0 = arith.constant 0 : i32
    %c0_i32_1 = arith.constant 0 : i32
    return %c0_i32, %c0_i32_0 : i32, i32
  }
  func.func @transform_6(%arg0: i32) -> (i32, i32) {
    %c0_i32 = arith.constant 0 : i32
    %c0_i32_0 = arith.constant 0 : i32
    %c0_i32_1 = arith.constant 0 : i32
    return %c0_i32, %c0_i32_0 : i32, i32
  }
  func.func @transform_7(%arg0: i32) -> (i32, i32) {
    %c0_i32 = arith.constant 0 : i32
    %c0_i32_0 = arith.constant 0 : i32
    %c0_i32_1 = arith.constant 0 : i32
    return %c0_i32, %c0_i32_0 : i32, i32
  }
  func.func @transform_8(%arg0: i32) -> (i32, i32) {
    %c0_i32 = arith.constant 0 : i32
    %c0_i32_0 = arith.constant 0 : i32
    %c0_i32_1 = arith.constant 0 : i32
    return %c0_i32, %c0_i32_0 : i32, i32
  }
  func.func @transform_9(%arg0: i32) -> (i32, i32) {
    %c0_i32 = arith.constant 0 : i32
    %c0_i32_0 = arith.constant 0 : i32
    %c0_i32_1 = arith.constant 0 : i32
    return %c0_i32, %c0_i32_0 : i32, i32
  }
  func.func @transform_10(%arg0: i32) -> (i32, i32) {
    %c0_i32 = arith.constant 0 : i32
    %c0_i32_0 = arith.constant 0 : i32
    %c0_i32_1 = arith.constant 0 : i32
    return %c0_i32, %c0_i32_0 : i32, i32
  }
  func.func @transform_11(%arg0: i32) -> (i32, i32) {
    %c0_i32 = arith.constant 0 : i32
    %c0_i32_0 = arith.constant 0 : i32
    %c0_i32_1 = arith.constant 0 : i32
    return %c0_i32, %c0_i32_0 : i32, i32
  }
  func.func @transform_12(%arg0: i32) -> (i32, i32) {
    %c0_i32 = arith.constant 0 : i32
    %c0_i32_0 = arith.constant 0 : i32
    %c0_i32_1 = arith.constant 0 : i32
    return %c0_i32, %c0_i32_0 : i32, i32
  }
  func.func @transform_13(%arg0: i32) -> (i32, i32) {
    %c0_i32 = arith.constant 0 : i32
    %c0_i32_0 = arith.constant 0 : i32
    %c0_i32_1 = arith.constant 0 : i32
    return %c0_i32, %c0_i32_0 : i32, i32
  }
  func.func @transform_14(%arg0: i32) -> (i32, i32) {
    %c0_i32 = arith.constant 0 : i32
    %c0_i32_0 = arith.constant 0 : i32
    %c0_i32_1 = arith.constant 0 : i32
    return %c0_i32, %c0_i32_0 : i32, i32
  }
  func.func @transform_15(%arg0: i32) -> (i32, i32) {
    %c0_i32 = arith.constant 0 : i32
    %c0_i32_0 = arith.constant 0 : i32
    %c0_i32_1 = arith.constant 0 : i32
    return %c0_i32, %c0_i32_0 : i32, i32
  }
  func.func @transform_16(%arg0: i32) -> (i32, i32) {
    %c0_i32 = arith.constant 0 : i32
    %c0_i32_0 = arith.constant 0 : i32
    %c0_i32_1 = arith.constant 0 : i32
    return %c0_i32, %c0_i32_0 : i32, i32
  }
  func.func @transform_17(%arg0: i32) -> (i32, i32) {
    %c0_i32 = arith.constant 0 : i32
    %c0_i32_0 = arith.constant 0 : i32
    %c0_i32_1 = arith.constant 0 : i32
    return %c0_i32, %c0_i32_0 : i32, i32
  }
  func.func @transform_18(%arg0: i32) -> (i32, i32) {
    %c0_i32 = arith.constant 0 : i32
    %c0_i32_0 = arith.constant 0 : i32
    %c0_i32_1 = arith.constant 0 : i32
    return %c0_i32, %c0_i32_0 : i32, i32
  }
  func.func @transform_19(%arg0: i32) -> (i32, i32) {
    %c0_i32 = arith.constant 0 : i32
    %c0_i32_0 = arith.constant 0 : i32
    %c0_i32_1 = arith.constant 0 : i32
    return %c0_i32, %c0_i32_0 : i32, i32
  }
  func.func @transform_20(%arg0: i32) -> (i32, i32) {
    %c0_i32 = arith.constant 0 : i32
    %c0_i32_0 = arith.constant 0 : i32
    return %arg0, %c0_i32 : i32, i32
  }
}

</mosaic_0001>

<bundles_post_ra>
// kernel: tpu_custom_call.1
= control target key start
LH: loop header
LB: loop body
LE: loop exit
PB: predicated region body
PF: predicated region fallthrough
CT: control target
= control target key end

     0   :  { %s2899_s0 = inlined_call_operand.vmem [shape: bf16[16,40], index: 0, kind: input, shape index: {}]   ;;  %s2900_s1 = inlined_call_operand.hbm [shape: bf16[40,80], index: 1, kind: input, shape index: {}]   ;;  %s2901_s2 = inlined_call_operand.vmem [shape: f32[1,80], index: 2, kind: input, shape index: {}]   ;;  %s2902_s3 = inlined_call_operand.vmem [shape: bf16[80,768], index: 3, kind: input, shape index: {}]   ;;  %s2903_s4 = inlined_call_operand.vmem [shape: f32[1,768], index: 4, kind: input, shape index: {}]   ;;  %s2904_s5 = inlined_call_operand.vmem [shape: bf16[128,80], index: 5, kind: input, shape index: {}]   ;;  %s2905_s6 = inlined_call_operand.vmem [shape: bf16[128,80], index: 6, kind: input, shape index: {}]   ;;  %s2906_s7 = inlined_call_operand.hbm [shape: f32[1,80], index: 7, kind: input, shape index: {}]   ;;  %s2907_s8 = inlined_call_operand.hbm [shape: f32[1,80], index: 8, kind: input, shape index: {}]   ;;  %s2908_s9 = inlined_call_operand.hbm [shape: f32[1,80], index: 9, kind: input, shape index: {}]   ;;  %s2909_s10 = inlined_call_operand.hbm [shape: bf16[80,256], index: 10, kind: input, shape index: {}]   ;;  %s2910_s11 = inlined_call_operand.vmem [shape: f32[1,256], index: 11, kind: input, shape index: {}]   ;;  %s2911_s12 = inlined_call_operand.vmem [shape: bf16[256,80], index: 12, kind: input, shape index: {}]   ;;  %s2912_s13 = inlined_call_operand.vmem [shape: f32[1,80], index: 13, kind: input, shape index: {}]   ;;  %s2913_s14 = inlined_call_operand.vmem [shape: f32[1,80], index: 14, kind: input, shape index: {}]   ;;  %s2914_s15 = inlined_call_operand.vmem [shape: f32[1,80], index: 15, kind: input, shape index: {}]   ;;  %s2915_s16 = inlined_call_operand.vmem [shape: bf16[80,80], index: 16, kind: input, shape index: {}]   ;;  %s2916_s17 = inlined_call_operand.vmem [shape: f32[1,80], index: 17, kind: input, shape index: {}]   ;;  %s2917_s18 = inlined_call_operand.hbm [shape: bf16[80,640], index: 18, kind: input, shape index: {}]   ;;  %s2918_s19 = inlined_call_operand.vmem [shape: f32[1,640], index: 19, kind: input, shape index: {}]   ;;  %s2919_s20 = inlined_call_operand.hbm [shape: f32[2,640], index: 20, kind: output, shape index: {}]  }
   0x1   :  { %2921 = sst [smem:[#allocation19_spill]] %s2899_s0 }
   0x2   :  { %2922 = sst [smem:[#allocation20_spill]] %s2900_s1 }
   0x3   :  { %2923 = sst [smem:[#allocation21_spill]] %s2901_s2 }
   0x4   :  { %2924 = sst [smem:[#allocation22_spill]] %s2902_s3 }
   0x5   :  { %2925 = sst [smem:[#allocation23_spill]] %s2903_s4 }
   0x6   :  { %25 = vsyncpa [#allocation3], 0 }
   0x7   :  { %26 = vsyncpa [#allocation6], 0 }
   0x8   :  { %27 = vsyncpa [#allocation9], 0 }
   0x9   :  { %28 = vsyncpa [#allocation12], 0  ;;  %s60_s23 = sshll.u32 %s2906_s7, 4  ;;  %s61_s23 = int_to_ptr.hbm [resolvable:$true] %s60_s23 }
   0xa   :  { %29 = vsyncpa [#allocation4], 0  ;;  %s2361_s24 = smov [#allocation5]   ;;  %s82_s26 = sshll.u32 %s2908_s9, 4  ;;  %s83_s26 = int_to_ptr.hbm [resolvable:$true] %s82_s26 }
   0xb   :  { %s62_s2 = sshll.u32 %s2361_s24, 4  ;;  %s2362_s27 = smov [#allocation8]   ;;  %s63_s2 = int_to_ptr.vmem [resolvable:$true] %s62_s2 }
   0xc   :  { %65 = dma.hbm_to_vmem [thread:$0]  %s61_s23, 16, %s63_s2, [#allocation6]  }
   0xd   :  { %s84_s28 = sshll.u32 %s2362_s27, 4  ;;  %s2926_s30 = sld [smem:[#allocation20_spill]]  ;;  %s85_s28 = int_to_ptr.vmem [resolvable:$true] %s84_s28 }
   0xe   :  { %87 = dma.hbm_to_vmem [thread:$0]  %s83_s26, 16, %s85_s28, [#allocation9]  }
   0xf   :  { %s2363_s7 = smov [#allocation2]   ;;  %s71_s24 = sshll.u32 %s2907_s8, 4  ;;  %s72_s24 = int_to_ptr.hbm [resolvable:$true] %s71_s24 }
  0x10   :  { %s38_s21 = sshll.u32 %s2363_s7, 4  ;;  %s2364_s25 = smov 64   ;;  %s39_s21 = int_to_ptr.vmem [resolvable:$true] %s38_s21 }
  0x11   :  { %s2365_s9 = smov 4   ;;  %s2366_s23 = smov [#allocation7]  }
  0x12   :  { %s73_s2 = sshll.u32 %s2366_s23, 4  ;;  %s92_s4 = sshll.u32 %s2909_s10, 4  ;;  %s74_s2 = int_to_ptr.vmem [resolvable:$true] %s73_s2  ;;  %s93_s4 = int_to_ptr.hbm [resolvable:$true] %s92_s4 }
  0x13   :  { %s36_s0 = sshll.u32 %s2926_s30, 4  ;;  %s2367_s26 = smov [#allocation10]   ;;  %s37_s0 = int_to_ptr.hbm [resolvable:$true] %s36_s0 }
  0x14   :  { %44 = dma.hbm_to_vmem [thread:$0]  %s37_s0, 320, %s39_s21, [#allocation3], %s2364_s25, %s2364_s25, %s2365_s9  }
  0x15   :  { %76 = dma.hbm_to_vmem [thread:$0]  %s72_s24, 16, %s74_s2, [#allocation6]  }
  0x16   :  { %s94_s28 = sshll.u32 %s2367_s26, 4  ;;  %s119_s8 = sshll.u32 %s2917_s18, 4  ;;  %s95_s28 = int_to_ptr.vmem [resolvable:$true] %s94_s28  ;;  %s120_s8 = int_to_ptr.hbm [resolvable:$true] %s119_s8 }
  0x17   :  { %s2368_s7 = smov 128   ;;  %s2369_s1 = smov 8  }
  0x18   :  { %100 = dma.hbm_to_vmem [thread:$0]  %s93_s4, 1280, %s95_s28, [#allocation9], %s2368_s7, %s2368_s7, %s2369_s1  }
  0x19   :  { %s2370_s0 = smov [#allocation11]   ;;  %s2371_s22 = smov 320  }
  0x1a   :  { %s121_s21 = sshll.u32 %s2370_s0, 4  ;;  %s2372_s25 = smov 20   ;;  %s122_s21 = int_to_ptr.vmem [resolvable:$true] %s121_s21 }
  0x1b   :  { %127 = dma.hbm_to_vmem [thread:$0]  %s120_s8, 3200, %s122_s21, [#allocation12], %s2371_s22, %s2371_s22, %s2372_s25  }
  0x1c   :  { %2351 = dma.done.wait [#allocation3], 320  }
  0x1d   :  { %2352 = vsyncadd [#allocation3], 4294966976 }
  0x1e   :  { %2353 = dma.done.wait [#allocation6], 32  }
  0x1f   :  { %2354 = vsyncadd [#allocation6], 4294967264 }
  0x20   :  { %2355 = dma.done.wait [#allocation9], 1296  }
  0x21   :  { %2356 = vsyncadd [#allocation9], 4294966000 }
  0x22   :  { %2357 = dma.done.wait [#allocation12], 3200  }
  0x23   :  { %2358 = vsyncadd [#allocation12], 4294964096  ;;  %v161_v0 = vld [vmem:[#allocation2 + $0x10] sm:$0xf]  ;;  %vm190_vm0 = vcmask 1043456   ;;  %s2927_s24 = sld [smem:[#allocation22_spill]] }
  0x24   :  { %v180_v1 = vunpack.c.l.b16 %v161_v0  ;;  %v2032_v19 = vld [vmem:[#allocation2 + $0x8] sm:$0xff]  ;;  %v2031_v25 = vld [vmem:[#allocation2] sm:$0xff]  ;;  %s2928_s0 = sld [smem:[#allocation19_spill]]  ;;  %vm186_vm1 = vcmask 326656   ;;  %vm403_vm2 = vcmask 654336   ;;  %vm523_vm3 = vcmask 64512  }
  0x25   :  { %s2929_s30 = sld [smem:[#allocation21_spill]] }
  0x26   :  { %v183_v8 = vpack.c.b16 %v180_v1, %v180_v1  ;;  %s2930_s7 = sld [smem:[#allocation23_spill]] }
  0x28   :  { %v192_v15 = vsel %vm190_vm0, %v183_v8, 0 }
  0x29   :  { %v1702_v2 = vld [vmem:[%s2927_s24 + $0xc0] sm:$0xf]  ;;  %v2060_v3 = vld [vmem:[%s2927_s24 + $0xd4] sm:$0xf0]  ;;  %v2057_v5 = vld [vmem:[%s2927_s24 + $0xc4] sm:$0xf]  ;;  %199 = vmatpush.bf16.msra.mxu0 %v192_v15 }
  0x2a   :  { %v1703_v4 = vor.u32 %v2060_v3, %v1702_v2  ;;  %v1704_v6 = vld [vmem:[%s2927_s24 + $0xd8] sm:$0xf0]  ;;  %v1710_v7 = vld [vmem:[%s2927_s24 + $0xc8] sm:$0xf]  ;;  %v2061_v10 = vld [vmem:[%s2927_s24 + $0xdc] sm:$0xf0] }
  0x2b   :  { %v1707_v9 = vor.u32 %v2057_v5, %v1704_v6  ;;  %v1711_v11 = vor.u32 %v2061_v10, %v1710_v7  ;;  %v1678_v12 = vld [vmem:[%s2927_s24 + $0x90] sm:$0xf]  ;;  %v2054_v13 = vld [vmem:[%s2927_s24 + $0xa4] sm:$0xf0]  ;;  %v2051_v14 = vld [vmem:[%s2927_s24 + $0x94] sm:$0xf] }
  0x2c   :  { %410 = vmatpush.bf16.msra.mxu1 %v1703_v4  ;;  %v1679_v16 = vor.u32 %v2054_v13, %v1678_v12  ;;  %v1680_v17 = vld [vmem:[%s2927_s24 + $0xa8] sm:$0xf0]  ;;  %v1686_v18 = vld [vmem:[%s2927_s24 + $0x98] sm:$0xf]  ;;  %v2055_v22 = vld [vmem:[%s2927_s24 + $0xac] sm:$0xf0] }
  0x2d   :  { %424 = vmatpush.bf16.msra.mxu2 %v1707_v9  ;;  %438 = vmatpush.bf16.msra.mxu3 %v1711_v11  ;;  %v2058_v20 = vld [vmem:[%s2927_s24 + $0xcc] sm:$0xf]  ;;  %v1683_v21 = vor.u32 %v2051_v14, %v1680_v17  ;;  %v1712_v23 = vld [vmem:[%s2927_s24 + $0xe0] sm:$0xf0]  ;;  %v1687_v24 = vor.u32 %v2055_v22, %v1686_v18  ;;  %v2052_v27 = vld [vmem:[%s2927_s24 + $0x9c] sm:$0xf] }
  0x2e   :  { %200 = vmatpush.bf16.msra.mxu0 %v2032_v19  ;;  %v1715_v26 = vor.u32 %v2058_v20, %v1712_v23  ;;  %v1688_v28 = vld [vmem:[%s2927_s24 + $0xb0] sm:$0xf0]  ;;  %v2030_v29 = vld [vmem:[%s2928_s0] sm:$0xff]  ;;  %v2048_v32 = vld [vmem:[%s2927_s24 + $0x74] sm:$0xf0] }
  0x2f   :  { %v1691_v30 = vor.u32 %v2052_v27, %v1688_v28  ;;  %v1654_v31 = vld [vmem:[%s2927_s24 + $0x60] sm:$0xf]  ;;  %v2045_v33 = vld [vmem:[%s2927_s24 + $0x64] sm:$0xf]  ;;  %v1656_v35 = vld [vmem:[%s2927_s24 + $0x78] sm:$0xf0] }
  0x30   :  { %411 = vmatpush.bf16.msra.mxu1 %v1679_v16  ;;  %v1655_v34 = vor.u32 %v2048_v32, %v1654_v31  ;;  %v1662_v36 = vld [vmem:[%s2927_s24 + $0x68] sm:$0xf]  ;;  %v2049_v37 = vld [vmem:[%s2927_s24 + $0x7c] sm:$0xf0]  ;;  %v1659_v38 = vor.u32 %v2045_v33, %v1656_v35  ;;  %v2046_v40 = vld [vmem:[%s2927_s24 + $0x6c] sm:$0xf] }
  0x31   :  { %425 = vmatpush.bf16.msra.mxu2 %v1683_v21  ;;  %439 = vmatpush.bf16.msra.mxu3 %v1687_v24  ;;  %v1663_v39 = vor.u32 %v2049_v37, %v1662_v36  ;;  %v1664_v41 = vld [vmem:[%s2927_s24 + $0x80] sm:$0xf0]  ;;  %v1630_v43 = vld [vmem:[%s2927_s24 + $0x30] sm:$0xf]  ;;  %v2042_v44 = vld [vmem:[%s2927_s24 + $0x44] sm:$0xf0] }
  0x32   :  { %201 = vmatpush.bf16.msra.mxu0 %v2031_v25  ;;  %v1667_v42 = vor.u32 %v2046_v40, %v1664_v41  ;;  %v2039_v45 = vld [vmem:[%s2927_s24 + $0x34] sm:$0xf]  ;;  %v1631_v46 = vor.u32 %v2042_v44, %v1630_v43  ;;  %v1632_v47 = vld [vmem:[%s2927_s24 + $0x48] sm:$0xf0]  ;;  %v1638_v48 = vld [vmem:[%s2927_s24 + $0x38] sm:$0xf] }
  0x33   :  { %v2043_v49 = vld [vmem:[%s2927_s24 + $0x4c] sm:$0xf0]  ;;  %v1635_v50 = vor.u32 %v2039_v45, %v1632_v47  ;;  %v2040_v52 = vld [vmem:[%s2927_s24 + $0x3c] sm:$0xf]  ;;  %v1640_v53 = vld [vmem:[%s2927_s24 + $0x50] sm:$0xf0] }
  0x34   :  { %412 = vmatpush.bf16.msra.mxu1 %v1655_v34  ;;  %v1639_v51 = vor.u32 %v2043_v49, %v1638_v48  ;;  %v1643_v54 = vor.u32 %v2040_v52, %v1640_v53  ;;  %v1606_v55 = vld [vmem:[%s2927_s24] sm:$0xf]  ;;  %v2036_v56 = vld [vmem:[%s2927_s24 + $0x14] sm:$0xf0]  ;;  %v2033_v57 = vld [vmem:[%s2927_s24 + $0x4] sm:$0xf] }
  0x35   :  { %1603 = vmatmul.msk.bf16.vlgmr.msra.gmra.mxu0 %vm186_vm1, %v2030_v29  ;;  %426 = vmatpush.bf16.msra.mxu2 %v1659_v38  ;;  %v1607_v58 = vor.u32 %v2036_v56, %v1606_v55  ;;  %v1608_v59 = vld [vmem:[%s2927_s24 + $0x18] sm:$0xf0]  ;;  %v1614_v60 = vld [vmem:[%s2927_s24 + $0x8] sm:$0xf]  ;;  %v2037_v61 = vld [vmem:[%s2927_s24 + $0x1c] sm:$0xf0] }
  0x36   :  { %452 = vmatpush.bf16.msrb.mxu0 %v1715_v26  ;;  %440 = vmatpush.bf16.msra.mxu3 %v1663_v39  ;;  %v1611_v62 = vor.u32 %v2033_v57, %v1608_v59  ;;  %v1615_v63 = vor.u32 %v2037_v61, %v1614_v60  ;;  %v2034_v0 = vld [vmem:[%s2927_s24 + $0xc] sm:$0xf]  ;;  %v1616_v1 = vld [vmem:[%s2927_s24 + $0x20] sm:$0xf0]  ;;  %v1718_v2 = vld [vmem:[%s2927_s24 + $0xd0] sm:$0xf] }
  0x37   :  { %v1619_v3 = vor.u32 %v2034_v0, %v1616_v1  ;;  %v2062_v4 = vld [vmem:[%s2927_s24 + $0xe4] sm:$0xf0]  ;;  %v2059_v5 = vld [vmem:[%s2927_s24 + $0xd4] sm:$0xf]  ;;  %v1720_v6 = vld [vmem:[%s2927_s24 + $0xe8] sm:$0xf0] }
  0x38   :  { %413 = vmatpush.bf16.msra.mxu1 %v1631_v46  ;;  %v1719_v7 = vor.u32 %v2062_v4, %v1718_v2  ;;  %v1723_v8 = vor.u32 %v2059_v5, %v1720_v6  ;;  %v1694_v9 = vld [vmem:[%s2927_s24 + $0xa0] sm:$0xf]  ;;  %v2056_v10 = vld [vmem:[%s2927_s24 + $0xb4] sm:$0xf0]  ;;  %v2053_v11 = vld [vmem:[%s2927_s24 + $0xa4] sm:$0xf] }
  0x39   :  { %427 = vmatpush.bf16.msra.mxu2 %v1635_v50  ;;  %v1695_v12 = vor.u32 %v2056_v10, %v1694_v9  ;;  %v1696_v13 = vld [vmem:[%s2927_s24 + $0xb8] sm:$0xf0]  ;;  %v1670_v15 = vld [vmem:[%s2927_s24 + $0x70] sm:$0xf]  ;;  %v2050_v16 = vld [vmem:[%s2927_s24 + $0x84] sm:$0xf0] }
  0x3a   :  { %453 = vmatpush.bf16.msrb.mxu0 %v1691_v30  ;;  %441 = vmatpush.bf16.msra.mxu3 %v1639_v51  ;;  %v1699_v14 = vor.u32 %v2053_v11, %v1696_v13  ;;  %v2047_v17 = vld [vmem:[%s2927_s24 + $0x74] sm:$0xf]  ;;  %v1672_v18 = vld [vmem:[%s2927_s24 + $0x88] sm:$0xf0]  ;;  %v1671_v19 = vor.u32 %v2050_v16, %v1670_v15  ;;  %v1646_v21 = vld [vmem:[%s2927_s24 + $0x40] sm:$0xf] }
  0x3b   :  { %v1675_v20 = vor.u32 %v2047_v17, %v1672_v18  ;;  %v2044_v22 = vld [vmem:[%s2927_s24 + $0x54] sm:$0xf0]  ;;  %v2041_v23 = vld [vmem:[%s2927_s24 + $0x44] sm:$0xf]  ;;  %v1648_v24 = vld [vmem:[%s2927_s24 + $0x58] sm:$0xf0] }
  0x3c   :  { %414 = vmatpush.bf16.msra.mxu1 %v1607_v58  ;;  %v1647_v25 = vor.u32 %v2044_v22, %v1646_v21  ;;  %v1651_v26 = vor.u32 %v2041_v23, %v1648_v24  ;;  %v1622_v27 = vld [vmem:[%s2927_s24 + $0x10] sm:$0xf]  ;;  %v2038_v28 = vld [vmem:[%s2927_s24 + $0x24] sm:$0xf0]  ;;  %v2035_v29 = vld [vmem:[%s2927_s24 + $0x14] sm:$0xf] }
  0x3d   :  { %428 = vmatpush.bf16.msra.mxu2 %v1611_v62  ;;  %v1624_v30 = vld [vmem:[%s2927_s24 + $0x28] sm:$0xf0]  ;;  %v1623_v31 = vor.u32 %v2038_v28, %v1622_v27  ;;  %v2149_v34 = vld [vmem:[%s2929_s30] ss:$0 sm:$0xff]  ;;  %s1578_s30 = sshll.u32 %s2919_s20, 4  ;;  %s1579_s30 = int_to_ptr.hbm [resolvable:$true] %s1578_s30 }
  0x3e   :  { %454 = vmatpush.bf16.msrb.mxu0 %v1667_v42  ;;  %442 = vmatpush.bf16.msra.mxu3 %v1615_v63  ;;  %v1627_v32 = vor.u32 %v2035_v29, %v1624_v30  ;;  %v239_v39 = vld [vmem:[%s2930_s7] sm:$0x3f] }
  0x3f   :  { %v244_v40 = vperm.slane %v239_v39, 3  ;;  %v242_v44 = vperm.slane %v239_v39, 1  ;;  %v243_v46 = vperm.slane %v239_v39, 2  ;;  %v241_v52 = vperm.slane %v239_v39, 0 }
  0x40   :  { %466 = vmatpush.bf16.msrb.mxu1 %v1719_v7  ;;  %v245_v57 = vperm.slane %v239_v39, 4  ;;  %v246_v4 = vperm.slane %v239_v39, 5 }
  0x41   :  { %480 = vmatpush.bf16.msrb.mxu2 %v1723_v8 }
  0x42   :  { %455 = vmatpush.bf16.msrb.mxu0 %v1643_v54 }
  0x44   :  { %467 = vmatpush.bf16.msrb.mxu1 %v1695_v12 }
  0x45   :  { %481 = vmatpush.bf16.msrb.mxu2 %v1699_v14 }
  0x46   :  { %456 = vmatpush.bf16.msrb.mxu0 %v1619_v3 }
  0x48   :  { %468 = vmatpush.bf16.msrb.mxu1 %v1671_v19 }
  0x49   :  { %482 = vmatpush.bf16.msrb.mxu2 %v1675_v20 }
  0x4c   :  { %469 = vmatpush.bf16.msrb.mxu1 %v1647_v25 }
  0x4d   :  { %483 = vmatpush.bf16.msrb.mxu2 %v1651_v26 }
  0x50   :  { %470 = vmatpush.bf16.msrb.mxu1 %v1623_v31 }
  0x51   :  { %484 = vmatpush.bf16.msrb.mxu2 %v1627_v32 }
  0xb2   :  { %v203_v33 = vpop.f32.mrf.mxu0 }
  0xb3   :  { %v2685_v36 = vadd.f32 %v2149_v34, %v203_v33 }
  0xba   :  { %v205_v35 = vpop.f32.mrf.mxu0 }
  0xbb   :  { %v2687_v37 = vadd.f32 %v2149_v34, %v205_v35 }
  0xbd   :  { %v208_v38 = vpack.c.bf16 %v2687_v37, %v2685_v36 }
  0xbf   :  { %1724 = vmatmul.msk.bf16.vlgmr.msra.gmra.mxu1 %vm403_vm2, %v208_v38  ;;  %1725 = vmatmul.msk.bf16.vlgmr.msra.gmra.mxu2 %vm403_vm2, %v208_v38 }
  0xc0   :  { %1726 = vmatmul.msk.bf16.vlgmr.msra.gmra.mxu3 %vm403_vm2, %v208_v38  ;;  %1727 = vmatmul.msk.bf16.vlgmr.msrb.gmra.mxu0 %vm403_vm2, %v208_v38 }
  0xcf   :  { %1728 = vmatmul.msk.bf16.vlgmr.msrb.gmra.mxu1 %vm403_vm2, %v208_v38  ;;  %1729 = vmatmul.msk.bf16.vlgmr.msrb.gmra.mxu2 %vm403_vm2, %v208_v38 }
 0x13c   :  { %v416_v41 = vpop.f32.mrf.mxu1 }
 0x13d   :  { %v458_v42 = vpop.f32.mrf.mxu0  ;;  %v417_v56 = vadd.f32 %v416_v41, %v241_v52 }
 0x13e   :  { %v459_v43 = vadd.f32 %v458_v42, %v244_v40 }
 0x13f   :  { %v491_v63 = vpack.c.bf16 %v417_v56, %v417_v56 }
 0x140   :  { %v589_v45 = vpack.c.bf16 %v459_v43, %v459_v43 }
 0x142   :  { %600 = vmatpush.bf16.xpose.msra.mxu2 %v589_v45  ;;  %v430_v47 = vpop.f32.mrf.mxu2 }
 0x143   :  { %v431_v48 = vadd.f32 %v430_v47, %v242_v44  ;;  %v444_v49 = vpop.f32.mrf.mxu3 }
 0x144   :  { %v445_v50 = vadd.f32 %v444_v49, %v243_v46  ;;  %v418_v51 = vpop.f32.mrf.mxu1 }
 0x145   :  { %v587_v53 = vpack.c.bf16 %v431_v48, %v431_v48  ;;  %v460_v55 = vpop.f32.mrf.mxu0  ;;  %v419_v5 = vadd.f32 %v418_v51, %v241_v52 }
 0x146   :  { %v493_v54 = vpack.c.bf16 %v445_v50, %v445_v50  ;;  %v461_v59 = vadd.f32 %v460_v55, %v244_v40 }
 0x147   :  { %v492_v10 = vpack.c.bf16 %v419_v5, %v419_v5 }
 0x148   :  { %504 = vmatpush.bf16.xpose.msrb.mxu3 %v493_v54  ;;  %v590_v2 = vpack.c.bf16 %v461_v59, %v461_v59  ;;  %v2069_v59 = vld [vmem:[%s2904_s5 + $0x30] sm:$0xff] }
 0x149   :  { %601 = vmatmul.bf16.vlgmr.msra.gmra.mxu2 %v587_v53 }
 0x14a   :  { %v432_v58 = vpop.f32.mrf.mxu2 }
 0x14b   :  { %v446_v60 = vpop.f32.mrf.mxu3  ;;  %v433_v20 = vadd.f32 %v432_v58, %v242_v44  ;;  %v2078_v58 = vld [vmem:[%s2905_s6 + $0x38] sm:$0xff] }
 0x14c   :  { %v447_v61 = vadd.f32 %v446_v60, %v243_v46  ;;  %v472_v62 = vpop.f32.mrf.mxu1  ;;  %762 = vmatpush.bf16.msrb.mxu2 %v2078_v58 }
 0x14d   :  { %v473_v0 = vadd.f32 %v472_v62, %v245_v57  ;;  %v588_v21 = vpack.c.bf16 %v433_v20, %v433_v20  ;;  %v2074_v20 = vld [vmem:[%s2905_s6 + $0x18] sm:$0xff] }
 0x14e   :  { %v494_v1 = vpack.c.bf16 %v447_v61, %v447_v61  ;;  %v2077_v61 = vld [vmem:[%s2905_s6 + $0x30] sm:$0xff] }
 0x14f   :  { %v495_v3 = vpack.c.bf16 %v473_v0, %v473_v0  ;;  %505 = vmatmul.bf16.vlgmr.msrb.gmra.mxu3 %v491_v63 }
 0x150   :  { %517 = vmatpush.bf16.xpose.msra.mxu0 %v494_v1  ;;  %763 = vmatpush.bf16.msrb.mxu2 %v2077_v61 }
 0x151   :  { %v552_v6 = vsel %vm190_vm0, %v495_v3, 0  ;;  %v2076_v3 = vld [vmem:[%s2905_s6 + $0x28] sm:$0xff] }
 0x152   :  { %v486_v7 = vpop.f32.mrf.mxu2  ;;  %561 = vmatpush.bf16.msra.mxu3 %v552_v6 }
 0x153   :  { %v487_v8 = vadd.f32 %v486_v7, %v246_v4 }
 0x154   :  { %v474_v9 = vpop.f32.mrf.mxu1  ;;  %764 = vmatpush.bf16.msrb.mxu2 %v2076_v3 }
 0x155   :  { %v591_v11 = vpack.c.bf16 %v487_v8, %v487_v8  ;;  %v475_v12 = vadd.f32 %v474_v9, %v245_v57  ;;  %v2070_v57 = vld [vmem:[%s2904_s5 + $0x38] sm:$0xff] }
 0x156   :  { %v2066_v9 = vld [vmem:[%s2904_s5 + $0x18] sm:$0xff] }
 0x157   :  { %v647_v13 = vsel %vm190_vm0, %v591_v11, 0  ;;  %v496_v14 = vpack.c.bf16 %v475_v12, %v475_v12  ;;  %518 = vmatmul.bf16.vlgmr.msra.gmra.mxu0 %v492_v10  ;;  %v2065_v12 = vld [vmem:[%s2904_s5 + $0x10] sm:$0xff] }
 0x158   :  { %613 = vmatpush.bf16.xpose.msrb.mxu0 %v590_v2  ;;  %656 = vmatpush.bf16.msrb.mxu3 %v647_v13  ;;  %v2068_v2 = vld [vmem:[%s2904_s5 + $0x28] sm:$0xff] }
 0x159   :  { %v571_v15 = vsel %vm190_vm0, %v496_v14, 0  ;;  %v2064_v14 = vld [vmem:[%s2904_s5 + $0x8] sm:$0xff] }
 0x15a   :  { %v488_v16 = vpop.f32.mrf.mxu2  ;;  %580 = vmatpush.bf16.msra.mxu1 %v571_v15 }
 0x15b   :  { %v489_v17 = vadd.f32 %v488_v16, %v246_v4  ;;  %v2067_v4 = vld [vmem:[%s2904_s5 + $0x20] sm:$0xff] }
 0x15d   :  { %v592_v18 = vpack.c.bf16 %v489_v17, %v489_v17 }
 0x15f   :  { %v666_v19 = vsel %vm190_vm0, %v592_v18, 0  ;;  %v2075_v18 = vld [vmem:[%s2905_s6 + $0x20] sm:$0xff] }
 0x160   :  { %675 = vmatpush.bf16.msrb.mxu1 %v666_v19  ;;  %824 = vmatpush.bf16.msra.mxu0 %v2070_v57  ;;  %v2063_v19 = vld [vmem:[%s2904_s5] sm:$0xff] }
 0x161   :  { %765 = vmatpush.bf16.msrb.mxu2 %v2075_v18  ;;  %v1808_v18 = vld [vmem:[#allocation10 + $0x10] sm:$0xf] }
 0x164   :  { %825 = vmatpush.bf16.msra.mxu0 %v2069_v59 }
 0x165   :  { %766 = vmatpush.bf16.msrb.mxu2 %v2074_v20  ;;  %v2081_v20 = vld [vmem:[#allocation10 + $0x14] sm:$0xf] }
 0x167   :  { %614 = vmatmul.bf16.vlgmr.msrb.gmra.mxu0 %v588_v21  ;;  %v2073_v21 = vld [vmem:[%s2905_s6 + $0x10] sm:$0xff] }
 0x168   :  { %826 = vmatpush.bf16.msra.mxu0 %v2068_v2  ;;  %v2087_v2 = vld [vmem:[#allocation10 + $0x44] sm:$0xf] }
 0x169   :  { %767 = vmatpush.bf16.msrb.mxu2 %v2073_v21 }
 0x16c   :  { %827 = vmatpush.bf16.msra.mxu0 %v2067_v4  ;;  %v1834_v4 = vld [vmem:[#allocation10 + $0x48] sm:$0xf0] }
 0x170   :  { %828 = vmatpush.bf16.msra.mxu0 %v2066_v9 }
 0x174   :  { %829 = vmatpush.bf16.msra.mxu0 %v2065_v12  ;;  %v1816_v12 = vld [vmem:[#allocation10 + $0x20] sm:$0xf] }
 0x178   :  { %830 = vmatpush.bf16.msra.mxu0 %v2064_v14  ;;  %v2083_v14 = vld [vmem:[#allocation10 + $0x24] sm:$0xf] }
 0x17c   :  { %831 = vmatpush.bf16.msra.mxu0 %v2063_v19  ;;  %v2082_v19 = vld [vmem:[#allocation10 + $0x14] sm:$0xf0] }
 0x17d   :  { %v1809_v21 = vor.u32 %v2082_v19, %v1808_v18 }
 0x1cc   :  { %v602_v22 = vpop.f32.mrf.mxu2 }
 0x1cd   :  { %v619_v23 = vsel %vm523_vm3, %v602_v22, -inf }
 0x1ce   :  { %620 = vmax.xlane.f32.xlu1 %v619_v23  ;;  %v2071_v23 = vld [vmem:[%s2905_s6] sm:$0xff] }
 0x1d2   :  { %v506_v24 = vpop.f32.mrf.mxu3 }
 0x1d3   :  { %v524_v25 = vsel %vm523_vm3, %v506_v24, -inf }
 0x1d4   :  { %v519_v26 = vpop.f32.mrf.mxu0  ;;  %v604_v27 = vpop.f32.mrf.mxu2  ;;  %525 = vmax.xlane.f32.xlu0 %v524_v25 }
 0x1d5   :  { %v527_v29 = vsel %vm523_vm3, %v519_v26, -inf }
 0x1da   :  { %v508_v28 = vpop.f32.mrf.mxu3 }
 0x1dc   :  { %v521_v30 = vpop.f32.mrf.mxu0  ;;  %528 = vmax.xlane.f32.xlu0 %v527_v29 }
 0x1e4   :  { %v615_v31 = vpop.f32.mrf.mxu0 }
 0x1e5   :  { %v622_v32 = vsel %vm523_vm3, %v615_v31, -inf }
 0x1e6   :  { %623 = vmax.xlane.f32.xlu1 %v622_v32 }
 0x1ec   :  { %v617_v33 = vpop.f32.mrf.mxu0 }
 0x241   :  { %v621_v34 = vpop.xlane.xlu1 %620 }
 0x242   :  { %v625_v35 = vsub.f32 %v602_v22, %v621_v34  ;;  %v2072_v22 = vld [vmem:[%s2905_s6 + $0x8] sm:$0xff] }
 0x243   :  { %768 = vmatpush.bf16.msrb.mxu2 %v2072_v22  ;;  %v1810_v22 = vld [vmem:[#allocation10 + $0x18] sm:$0xf0] }
 0x244   :  { %v627_v38 = vmul.f32 1.442695, %v625_v35  ;;  %v2150_v35 = vld [vmem:[#allocation5] ss:$0 sm:$0xff] }
 0x246   :  { %2157 = vpow2.f32 %v627_v38 }
 0x247   :  { %v526_v39 = vpop.xlane.xlu0 %525  ;;  %769 = vmatpush.bf16.msrb.mxu2 %v2071_v23  ;;  %v1813_v23 = vor.u32 %v2081_v20, %v1810_v22 }
 0x248   :  { %v530_v40 = vsub.f32 %v506_v24, %v526_v39 }
 0x24a   :  { %v532_v41 = vmul.f32 1.442695, %v530_v40 }
 0x24c   :  { %v2158_v42 = vpop.eup %2157  ;;  %2159 = vpow2.f32 %v532_v41 }
 0x24d   :  { %v631_v43 = vsel %vm523_vm3, %v2158_v42, 0.0 }
 0x24e   :  { %632 = vadd.xlane.f32.xlu0 %v631_v43 }
 0x24f   :  { %v529_v44 = vpop.xlane.xlu0 %528 }
 0x250   :  { %v531_v45 = vsub.f32 %v519_v26, %v529_v44 }
 0x252   :  { %v2160_v46 = vpop.eup %2159  ;;  %v534_v47 = vmul.f32 1.442695, %v531_v45 }
 0x253   :  { %v536_v48 = vsel %vm523_vm3, %v2160_v46, 0.0 }
 0x254   :  { %2161 = vpow2.f32 %v534_v47  ;;  %537 = vadd.xlane.f32.xlu2 %v536_v48 }
 0x259   :  { %v624_v49 = vpop.xlane.xlu1 %623 }
 0x25a   :  { %v2162_v50 = vpop.eup %2161  ;;  %v626_v51 = vsub.f32 %v615_v31, %v624_v49  ;;  %v2373_v49 = vmov 80.0  }
 0x25b   :  { %v539_v52 = vsel %vm523_vm3, %v2162_v50, 0.0 }
 0x25c   :  { %v629_v53 = vmul.f32 1.442695, %v626_v51  ;;  %540 = vadd.xlane.f32.xlu2 %v539_v52 }
 0x25e   :  { %2163 = vpow2.f32 %v629_v53 }
 0x264   :  { %v2164_v54 = vpop.eup %2163 }
 0x265   :  { %v634_v55 = vsel %vm523_vm3, %v2164_v54, 0.0 }
 0x266   :  { %635 = vadd.xlane.f32.xlu1 %v634_v55 }
 0x2c1   :  { %v633_v0 = vpop.xlane.xlu0 %632 }
 0x2c7   :  { %v538_v56 = vpop.xlane.xlu2 %537 }
 0x2c8   :  { %2165 = vrcp.f32 %v538_v56 }
 0x2ce   :  { %v2166_v60 = vpop.eup %2165 }
 0x2cf   :  { %v544_v62 = vmul.f32 %v2166_v60, %v2160_v46  ;;  %v541_v63 = vpop.xlane.xlu2 %540 }
 0x2d0   :  { %2167 = vrcp.f32 %v541_v63 }
 0x2d1   :  { %v546_v1 = vpack.c.bf16 %v544_v62, %v544_v62  ;;  %2169 = vrcp.f32 %v633_v0  ;;  %v1832_v0 = vld [vmem:[#allocation10 + $0x40] sm:$0xf] }
 0x2d3   :  { %1730 = vmatmul.msk.bf16.vlgmr.msra.gmra.mxu3 %vm523_vm3, %v546_v1  ;;  %v2088_v1 = vld [vmem:[#allocation10 + $0x44] sm:$0xf0] }
 0x2d4   :  { %v1833_v3 = vor.u32 %v2088_v1, %v1832_v0 }
 0x2d6   :  { %v2168_v5 = vpop.eup %2167  ;;  %982 = vmatpush.bf16.msra.mxu3 %v1833_v3 }
 0x2d7   :  { %v545_v6 = vmul.f32 %v2168_v5, %v2162_v50  ;;  %v2170_v10 = vpop.eup %2169  ;;  %v1837_v5 = vor.u32 %v2087_v2, %v1834_v4 }
 0x2d8   :  { %v639_v11 = vmul.f32 %v2170_v10, %v2158_v42  ;;  %v1826_v10 = vld [vmem:[#allocation10 + $0x38] sm:$0xf0] }
 0x2d9   :  { %v547_v7 = vpack.c.bf16 %v545_v6, %v545_v6  ;;  %v636_v8 = vpop.xlane.xlu1 %635  ;;  %v1824_v6 = vld [vmem:[#allocation10 + $0x30] sm:$0xf] }
 0x2da   :  { %2171 = vrcp.f32 %v636_v8  ;;  %v641_v13 = vpack.c.bf16 %v639_v11, %v639_v11  ;;  %v2085_v8 = vld [vmem:[#allocation10 + $0x34] sm:$0xf] }
 0x2db   :  { %1731 = vmatmul.msk.bf16.vlgmr.msra.gmra.mxu1 %vm523_vm3, %v547_v7  ;;  %2173 = vrcp.f32 %v2373_v49  ;;  %v2086_v7 = vld [vmem:[#allocation10 + $0x34] sm:$0xf0]  ;;  %v1829_v11 = vor.u32 %v2085_v8, %v1826_v10  ;;  %v2090_v10 = vld [vmem:[%s2911_s12 + $0x8] sm:$0xff] }
 0x2dc   :  { %996 = vmatpush.bf16.msra.mxu1 %v1837_v5  ;;  %v1825_v9 = vor.u32 %v2086_v7, %v1824_v6  ;;  %v2093_v5 = vld [vmem:[%s2911_s12 + $0x20] sm:$0xff]  ;;  %v2092_v6 = vld [vmem:[%s2911_s12 + $0x18] sm:$0xff]  ;;  %v2098_v7 = vld [vmem:[%s2911_s12 + $0x48] sm:$0xff] }
 0x2dd   :  { %v2091_v8 = vld [vmem:[%s2911_s12 + $0x10] sm:$0xff] }
 0x2de   :  { %983 = vmatpush.bf16.msra.mxu3 %v1825_v9  ;;  %v2097_v9 = vld [vmem:[%s2911_s12 + $0x40] sm:$0xff] }
 0x2e0   :  { %v2172_v15 = vpop.eup %2171  ;;  %997 = vmatpush.bf16.msra.mxu1 %v1829_v11  ;;  %v2089_v11 = vld [vmem:[%s2911_s12] sm:$0xff] }
 0x2e1   :  { %v640_v16 = vmul.f32 %v2172_v15, %v2164_v54  ;;  %v2174_v50 = vpop.eup %2173 }
 0x2e2   :  { %v855_v51 = vmul.f32 80.0, %v2174_v50  ;;  %vm859_vm4 = vweird.f32 %v2174_v50 }
 0x2e3   :  { %1732 = vmatmul.msk.bf16.vlgmr.msrb.gmra.mxu3 %vm523_vm3, %v641_v13  ;;  %v642_v17 = vpack.c.bf16 %v640_v16, %v640_v16  ;;  %v2084_v13 = vld [vmem:[#allocation10 + $0x24] sm:$0xf0]  ;;  %v1818_v16 = vld [vmem:[#allocation10 + $0x28] sm:$0xf0] }
 0x2e4   :  { %v856_v52 = vsub.f32 1.0, %v855_v51  ;;  %v1817_v15 = vor.u32 %v2084_v13, %v1816_v12  ;;  %v920_v12 = vld [vmem:[%s2910_s11] sm:$0x3] }
 0x2e5   :  { %v922_v18 = vperm.slane %v920_v12, 0 }
 0x2e6   :  { %v857_v53 = vmul.f32 %v2174_v50, %v856_v52  ;;  %984 = vmatpush.bf16.msra.mxu3 %v1817_v15 }
 0x2e8   :  { %v858_v54 = vadd.f32 %v2174_v50, %v857_v53 }
 0x2ea   :  { %985 = vmatpush.bf16.msra.mxu3 %v1809_v21 }
 0x2eb   :  { %1733 = vmatmul.msk.bf16.vlgmr.msrb.gmra.mxu1 %vm523_vm3, %v642_v17  ;;  %v1821_v17 = vor.u32 %v2083_v14, %v1818_v16  ;;  %v923_v14 = vperm.slane %v920_v12, 1  ;;  %vm1265_vm3 = vcmask 1041409  }
 0x2ed   :  { %998 = vmatpush.bf16.msra.mxu1 %v1821_v17 }
 0x2f1   :  { %999 = vmatpush.bf16.msra.mxu1 %v1813_v23 }
 0x356   :  { %v563_v24 = vpop.f32.mrf.mxu3 }
 0x358   :  { %v582_v25 = vpop.f32.mrf.mxu1 }
 0x359   :  { %v586_v26 = vpack.c.bf16 %v582_v25, %v563_v24 }
 0x35b   :  { %832 = vmatmul.bf16.vlgmr.msra.gmra.mxu0 %v586_v26  ;;  %v1800_v26 = vld [vmem:[#allocation10] sm:$0xf] }
 0x35e   :  { %v565_v27 = vpop.f32.mrf.mxu3 }
 0x35f   :  { %v2080_v27 = vld [vmem:[#allocation10 + $0x4] sm:$0xf0] }
 0x360   :  { %v584_v28 = vpop.f32.mrf.mxu1 }
 0x361   :  { %v2079_v28 = vld [vmem:[#allocation10 + $0x4] sm:$0xf] }
 0x366   :  { %v658_v29 = vpop.f32.mrf.mxu3 }
 0x368   :  { %v677_v30 = vpop.f32.mrf.mxu1 }
 0x369   :  { %v681_v31 = vpack.c.bf16 %v677_v30, %v658_v29  ;;  %v1801_v29 = vor.u32 %v2080_v27, %v1800_v26  ;;  %v1802_v30 = vld [vmem:[#allocation10 + $0x8] sm:$0xf0] }
 0x36b   :  { %770 = vmatmul.bf16.vlgmr.msrb.gmra.mxu2 %v681_v31  ;;  %986 = vmatpush.bf16.msra.mxu3 %v1801_v29  ;;  %v2153_v29 = vld [vmem:[%s2912_s13] ss:$0 sm:$0xff] }
 0x36e   :  { %v660_v32 = vpop.f32.mrf.mxu3 }
 0x36f   :  { %v1805_v32 = vor.u32 %v2079_v28, %v1802_v30 }
 0x370   :  { %v679_v33 = vpop.f32.mrf.mxu1 }
 0x371   :  { %1000 = vmatpush.bf16.msra.mxu1 %v1805_v32  ;;  %v2104_v33 = vld [vmem:[%s2911_s12 + $0x78] sm:$0xff] }
 0x372   :  { %1159 = vmatpush.bf16.msrb.mxu3 %v2104_v33 }
 0x3d8   :  { %v833_v34 = vpop.f32.mrf.mxu0 }
 0x3e0   :  { %v835_v43 = vpop.f32.mrf.mxu0 }
 0x3ee   :  { %v771_v38 = vpop.f32.mrf.mxu2 }
 0x3ef   :  { %v834_v39 = vadd.f32 %v833_v34, %v771_v38  ;;  %v2096_v34 = vld [vmem:[%s2911_s12 + $0x38] sm:$0xff] }
 0x3f0   :  { %1145 = vmatpush.bf16.msra.mxu2 %v2096_v34 }
 0x3f1   :  { %v842_v40 = vadd.f32 %v2150_v35, %v834_v39  ;;  %v2103_v39 = vld [vmem:[%s2911_s12 + $0x70] sm:$0xff] }
 0x3f2   :  { %1160 = vmatpush.bf16.msrb.mxu3 %v2103_v39 }
 0x3f3   :  { %v844_v41 = vadd.f32 %v842_v40, %v2685_v36  ;;  %v2768_v36 = vsel %vm859_vm4, %v2174_v50, %v858_v54  ;;  %v2095_v40 = vld [vmem:[%s2911_s12 + $0x30] sm:$0xff]  ;;  %vm1565_vm4 = vcmask 1045508  }
 0x3f4   :  { %1146 = vmatpush.bf16.msra.mxu2 %v2095_v40 }
 0x3f5   :  { %v848_v42 = vsel %vm403_vm2, %v844_v41, 0.0 }
 0x3f6   :  { %849 = vadd.xlane.f32.xlu2 %v848_v42  ;;  %v773_v44 = vpop.f32.mrf.mxu2 }
 0x3f7   :  { %v836_v45 = vadd.f32 %v835_v43, %v773_v44  ;;  %v2102_v44 = vld [vmem:[%s2911_s12 + $0x68] sm:$0xff] }
 0x3f8   :  { %1161 = vmatpush.bf16.msrb.mxu3 %v2102_v44 }
 0x3f9   :  { %v843_v46 = vadd.f32 %v2150_v35, %v836_v45  ;;  %v2094_v45 = vld [vmem:[%s2911_s12 + $0x28] sm:$0xff] }
 0x3fa   :  { %1147 = vmatpush.bf16.msra.mxu2 %v2094_v45 }
 0x3fb   :  { %v845_v47 = vadd.f32 %v843_v46, %v2687_v37 }
 0x3fd   :  { %v851_v48 = vsel %vm403_vm2, %v845_v47, 0.0 }
 0x3fe   :  { %852 = vadd.xlane.f32.xlu0 %v851_v48  ;;  %v2101_v48 = vld [vmem:[%s2911_s12 + $0x60] sm:$0xff]  ;;  %1148 = vmatpush.bf16.msra.mxu2 %v2093_v5 }
 0x3ff   :  { %1162 = vmatpush.bf16.msrb.mxu3 %v2101_v48 }
 0x402   :  { %1149 = vmatpush.bf16.msra.mxu2 %v2092_v6 }
 0x406   :  { %1150 = vmatpush.bf16.msra.mxu2 %v2091_v8 }
 0x40a   :  { %1151 = vmatpush.bf16.msra.mxu2 %v2090_v10  ;;  %v2875_v10 = vld [vmem:[%s2914_s15] ss:$0 sm:$0xff] }
 0x40e   :  { %1152 = vmatpush.bf16.msra.mxu2 %v2089_v11 }
 0x469   :  { %v850_v55 = vpop.xlane.xlu2 %849 }
 0x46a   :  { %v861_v56 = vmul.f32 %v2768_v36, %v850_v55 }
 0x46c   :  { %v2771_v57 = vsub.f32 %v844_v41, %v861_v56 }
 0x46e   :  { %v865_v37 = vmul.f32 %v2771_v57, %v2771_v57 }
 0x470   :  { %v867_v58 = vsel %vm403_vm2, %v865_v37, 0.0  ;;  %v2151_v37 = vld [vmem:[#allocation7] ss:$0 sm:$0xff] }
 0x471   :  { %868 = vadd.xlane.f32.xlu1 %v867_v58  ;;  %v853_v59 = vpop.xlane.xlu0 %852 }
 0x472   :  { %v862_v60 = vmul.f32 %v2768_v36, %v853_v59 }
 0x474   :  { %v2777_v61 = vsub.f32 %v845_v47, %v862_v60 }
 0x476   :  { %v866_v62 = vmul.f32 %v2777_v61, %v2777_v61 }
 0x478   :  { %v870_v63 = vsel %vm403_vm2, %v866_v62, 0.0  ;;  %v2152_v62 = vld [vmem:[#allocation8] ss:$0 sm:$0xff] }
 0x479   :  { %871 = vadd.xlane.f32.xlu2 %v870_v63 }
 0x4e4   :  { %v869_v24 = vpop.xlane.xlu1 %868 }
 0x4e5   :  { %v873_v25 = vmul.f32 %v869_v24, %v2768_v36 }
 0x4e7   :  { %v875_v31 = vadd.f32 1e-05, %v873_v25 }
 0x4e9   :  { %2175 = vrsqrt.f32 %v875_v31  ;;  %vm883_vm6 = vweird.f32 %v875_v31 }
 0x4ec   :  { %v872_v35 = vpop.xlane.xlu2 %871 }
 0x4ed   :  { %v874_v38 = vmul.f32 %v872_v35, %v2768_v36 }
 0x4ef   :  { %v2176_v41 = vpop.eup %2175  ;;  %v876_v42 = vadd.f32 1e-05, %v874_v38 }
 0x4f0   :  { %v878_v43 = vmul.f32 %v2176_v41, %v875_v31  ;;  %vm884_vm5 = vweird.f32 %v2176_v41 }
 0x4f1   :  { %2177 = vrsqrt.f32 %v876_v42  ;;  %vm885_vm7 = vmor %vm883_vm6, %vm884_vm5  ;;  %vm893_vm9 = vweird.f32 %v876_v42 }
 0x4f2   :  { %v879_v46 = vmul.f32 %v2176_v41, %v878_v43 }
 0x4f4   :  { %v880_v47 = vmul.f32 0.5, %v879_v46 }
 0x4f6   :  { %v881_v49 = vsub.f32 1.5, %v880_v47 }
 0x4f7   :  { %v2178_v50 = vpop.eup %2177 }
 0x4f8   :  { %v882_v51 = vmul.f32 %v2176_v41, %v881_v49  ;;  %v888_v52 = vmul.f32 %v2178_v50, %v876_v42  ;;  %vm894_vm8 = vweird.f32 %v2178_v50 }
 0x4f9   :  { %vm895_vm10 = vmor %vm893_vm9, %vm894_vm8 }
 0x4fa   :  { %v889_v53 = vmul.f32 %v2178_v50, %v888_v52  ;;  %v886_v54 = vsel %vm885_vm7, %v2176_v41, %v882_v51 }
 0x4fb   :  { %v897_v58 = vmul.f32 %v886_v54, %v2771_v57  ;;  %v2100_v57 = vld [vmem:[%s2911_s12 + $0x58] sm:$0xff] }
 0x4fc   :  { %v890_v55 = vmul.f32 0.5, %v889_v53  ;;  %1163 = vmatpush.bf16.msrb.mxu3 %v2100_v57 }
 0x4fd   :  { %v902_v63 = vmul.f32 %v2151_v37, %v897_v58 }
 0x4fe   :  { %v891_v56 = vsub.f32 1.5, %v890_v55 }
 0x4ff   :  { %v907_v2 = vadd.f32 %v2152_v62, %v902_v63 }
 0x500   :  { %v892_v59 = vmul.f32 %v2178_v50, %v891_v56 }
 0x502   :  { %v896_v60 = vsel %vm895_vm10, %v2178_v50, %v892_v59  ;;  %v2108_v59 = vld [vmem:[%s2915_s16 + $0x18] sm:$0xff] }
 0x503   :  { %v898_v0 = vmul.f32 %v896_v60, %v2777_v61  ;;  %v2099_v61 = vld [vmem:[%s2911_s12 + $0x50] sm:$0xff] }
 0x504   :  { %1164 = vmatpush.bf16.msrb.mxu3 %v2099_v61 }
 0x505   :  { %v903_v1 = vmul.f32 %v2151_v37, %v898_v0  ;;  %v2109_v37 = vld [vmem:[%s2915_s16 + $0x20] sm:$0xff] }
 0x506   :  { %1304 = vmatpush.bf16.msrb.mxu1 %v2109_v37  ;;  %v1977_v37 = vld [vmem:[#allocation11 + $0x6c] sm:$0xf0] }
 0x507   :  { %v908_v3 = vadd.f32 %v2152_v62, %v903_v1  ;;  %v2107_v1 = vld [vmem:[%s2915_s16 + $0x10] sm:$0xff] }
 0x508   :  { %1165 = vmatpush.bf16.msrb.mxu3 %v2098_v7  ;;  %v2154_v7 = vld [vmem:[%s2913_s14] ss:$0 sm:$0xff] }
 0x509   :  { %v909_v4 = vpack.c.bf16 %v908_v3, %v907_v2 }
 0x50a   :  { %1305 = vmatpush.bf16.msrb.mxu1 %v2108_v59  ;;  %v2124_v59 = vld [vmem:[#allocation11 + $0x70] sm:$0xf0] }
 0x50b   :  { %1838 = vmatmul.msk.bf16.vlgmr.msra.gmra.mxu3 %vm403_vm2, %v909_v4  ;;  %1839 = vmatmul.msk.bf16.vlgmr.msra.gmra.mxu1 %vm403_vm2, %v909_v4 }
 0x50c   :  { %1166 = vmatpush.bf16.msrb.mxu3 %v2097_v9 }
 0x50e   :  { %1306 = vmatpush.bf16.msrb.mxu1 %v2107_v1 }
 0x588   :  { %v1002_v13 = vpop.f32.mrf.mxu1 }
 0x589   :  { %v1003_v16 = vadd.f32 %v1002_v13, %v923_v14 }
 0x58b   :  { %v1008_v20 = vmax.f32 %v1003_v16, 0.0  ;;  %v2130_v16 = vld [vmem:[#allocation11 + $0xa4] sm:$0xf] }
 0x58e   :  { %v988_v15 = vpop.f32.mrf.mxu3 }
 0x58f   :  { %v989_v22 = vadd.f32 %v988_v15, %v922_v18  ;;  %v2132_v15 = vld [vmem:[#allocation11 + $0xb0] sm:$0xf0] }
 0x590   :  { %v1004_v17 = vpop.f32.mrf.mxu1 }
 0x591   :  { %v1005_v19 = vadd.f32 %v1004_v17, %v923_v14  ;;  %v1007_v26 = vmax.f32 %v989_v22, 0.0  ;;  %v2007_v14 = vld [vmem:[#allocation11 + $0xa0] sm:$0xf] }
 0x593   :  { %v1010_v21 = vmax.f32 %v1005_v19, 0.0  ;;  %v2009_v19 = vld [vmem:[#allocation11 + $0xb4] sm:$0xf0] }
 0x594   :  { %v2012_v22 = vor.u32 %v2130_v16, %v2009_v19  ;;  %v2115_v16 = vld [vmem:[#allocation11 + $0x2c] sm:$0xf] }
 0x595   :  { %v1012_v23 = vpack.c.bf16 %v1010_v21, %v1008_v20  ;;  %v2131_v20 = vld [vmem:[#allocation11 + $0xac] sm:$0xf] }
 0x596   :  { %v990_v24 = vpop.f32.mrf.mxu3 }
 0x597   :  { %v991_v25 = vadd.f32 %v990_v24, %v922_v18  ;;  %1167 = vmatmul.bf16.vlgmr.msrb.gmra.mxu3 %v1012_v23  ;;  %v2008_v18 = vor.u32 %v2132_v15, %v2007_v14  ;;  %v2017_v23 = vld [vmem:[#allocation11 + $0xbc] sm:$0xf0]  ;;  %v2023_v24 = vld [vmem:[#allocation11 + $0xb0] sm:$0xf] }
 0x599   :  { %v1009_v27 = vmax.f32 %v991_v25, 0.0  ;;  %v2134_v25 = vld [vmem:[#allocation11 + $0xc0] sm:$0xf0]  ;;  %1494 = vmatpush.bf16.msrb.mxu0 %v2008_v18  ;;  %v2116_v18 = vld [vmem:[#allocation11 + $0x34] sm:$0xf] }
 0x59b   :  { %v1011_v28 = vpack.c.bf16 %v1009_v27, %v1007_v26  ;;  %v2020_v27 = vor.u32 %v2131_v20, %v2017_v23  ;;  %v1957_v20 = vld [vmem:[#allocation11 + $0x44] sm:$0xf0] }
 0x59c   :  { %v1960_v23 = vor.u32 %v2116_v18, %v1957_v20 }
 0x59d   :  { %1153 = vmatmul.bf16.vlgmr.msra.gmra.mxu2 %v1011_v28  ;;  %v2024_v28 = vor.u32 %v2134_v25, %v2023_v24  ;;  %v1927_v25 = vld [vmem:[#allocation11] sm:$0xf] }
 0x59e   :  { %1533 = vmatpush.bf16.msrb.mxu2 %v2020_v27 }
 0x59f   :  { %1546 = vmatpush.bf16.msra.mxu3 %v2024_v28  ;;  %v2110_v28 = vld [vmem:[#allocation11 + $0x4] sm:$0xf] }
 0x61a   :  { %v1168_v30 = vpop.f32.mrf.mxu3 }
 0x620   :  { %v1154_v31 = vpop.f32.mrf.mxu2 }
 0x621   :  { %v1155_v32 = vadd.f32 %v2153_v29, %v1154_v31  ;;  %v2125_v31 = vld [vmem:[#allocation11 + $0x7c] sm:$0xf] }
 0x622   :  { %v1170_v40 = vpop.f32.mrf.mxu3 }
 0x623   :  { %v1169_v33 = vadd.f32 %v1168_v30, %v1155_v32  ;;  %v2127_v30 = vld [vmem:[#allocation11 + $0x88] sm:$0xf0] }
 0x625   :  { %v1173_v34 = vadd.f32 %v1169_v33, %v907_v2 }
 0x627   :  { %v1177_v35 = vsel %vm403_vm2, %v1173_v34, 0.0 }
 0x628   :  { %v1156_v38 = vpop.f32.mrf.mxu2  ;;  %1178 = vadd.xlane.f32.xlu0 %v1177_v35  ;;  %v2126_v35 = vld [vmem:[#allocation11 + $0x84] sm:$0xf] }
 0x629   :  { %v1157_v39 = vadd.f32 %v2153_v29, %v1156_v38  ;;  %v1987_v29 = vld [vmem:[#allocation11 + $0x78] sm:$0xf] }
 0x62a   :  { %v1988_v33 = vor.u32 %v2127_v30, %v1987_v29  ;;  %v1929_v29 = vld [vmem:[#allocation11 + $0x14] sm:$0xf0]  ;;  %v2015_v30 = vld [vmem:[#allocation11 + $0xa8] sm:$0xf] }
 0x62b   :  { %v1171_v41 = vadd.f32 %v1170_v40, %v1157_v39 }
 0x62c   :  { %1495 = vmatpush.bf16.msrb.mxu0 %v1988_v33  ;;  %v2111_v33 = vld [vmem:[#allocation11 + $0xc] sm:$0xf] }
 0x62d   :  { %v1174_v42 = vadd.f32 %v1171_v41, %v908_v3  ;;  %v2106_v3 = vld [vmem:[%s2915_s16 + $0x8] sm:$0xff]  ;;  %v1997_v41 = vld [vmem:[#allocation11 + $0x94] sm:$0xf0] }
 0x62e   :  { %1307 = vmatpush.bf16.msrb.mxu1 %v2106_v3 }
 0x62f   :  { %v1180_v43 = vsel %vm403_vm2, %v1174_v42, 0.0 }
 0x630   :  { %1181 = vadd.xlane.f32.xlu1 %v1180_v43 }
 0x69b   :  { %v1179_v44 = vpop.xlane.xlu0 %1178 }
 0x69c   :  { %v1183_v45 = vmul.f32 %v1179_v44, %v2768_v36  ;;  %v2000_v44 = vor.u32 %v2126_v35, %v1997_v41 }
 0x69e   :  { %v1185_v46 = vsub.f32 %v1173_v34, %v1183_v45  ;;  %v1989_v34 = vld [vmem:[#allocation11 + $0x8c] sm:$0xf0]  ;;  %v2129_v45 = vld [vmem:[#allocation11 + $0x98] sm:$0xf0]  ;;  %1534 = vmatpush.bf16.msrb.mxu2 %v2000_v44 }
 0x69f   :  { %v1992_v40 = vor.u32 %v2125_v31, %v1989_v34  ;;  %v1932_v31 = vor.u32 %v2110_v28, %v1929_v29  ;;  %v1937_v34 = vld [vmem:[#allocation11 + $0x1c] sm:$0xf0] }
 0x6a0   :  { %v1187_v47 = vmul.f32 %v1185_v46, %v1185_v46 }
 0x6a2   :  { %v1189_v48 = vsel %vm403_vm2, %v1187_v47, 0.0  ;;  %v2122_v47 = vld [vmem:[#allocation11 + $0x60] sm:$0xf0] }
 0x6a3   :  { %v1182_v49 = vpop.xlane.xlu1 %1181  ;;  %1190 = vadd.xlane.f32.xlu2 %v1189_v48 }
 0x6a4   :  { %v1184_v50 = vmul.f32 %v1182_v49, %v2768_v36 }
 0x6a6   :  { %v2847_v51 = vsub.f32 %v1174_v42, %v1184_v50  ;;  %v2003_v42 = vld [vmem:[#allocation11 + $0x88] sm:$0xf] }
 0x6a7   :  { %v2004_v49 = vor.u32 %v2129_v45, %v2003_v42  ;;  %v1995_v42 = vld [vmem:[#allocation11 + $0x80] sm:$0xf]  ;;  %v1975_v45 = vld [vmem:[#allocation11 + $0x58] sm:$0xf] }
 0x6a8   :  { %v1188_v52 = vmul.f32 %v2847_v51, %v2847_v51 }
 0x6a9   :  { %1547 = vmatpush.bf16.msra.mxu3 %v2004_v49  ;;  %v2118_v49 = vld [vmem:[#allocation11 + $0x40] sm:$0xf0] }
 0x6aa   :  { %v1192_v53 = vsel %vm403_vm2, %v1188_v52, 0.0  ;;  %v2120_v52 = vld [vmem:[#allocation11 + $0x54] sm:$0xf] }
 0x6ab   :  { %1193 = vadd.xlane.f32.xlu0 %v1192_v53  ;;  %v1969_v53 = vld [vmem:[#allocation11 + $0x64] sm:$0xf0] }
 0x716   :  { %v1191_v54 = vpop.xlane.xlu2 %1190 }
 0x717   :  { %v1195_v55 = vmul.f32 %v1191_v54, %v2768_v36  ;;  %v2121_v54 = vld [vmem:[#allocation11 + $0x5c] sm:$0xf] }
 0x719   :  { %v1197_v56 = vadd.f32 1e-05, %v1195_v55 }
 0x71b   :  { %2179 = vrsqrt.f32 %v1197_v56  ;;  %vm1205_vm12 = vweird.f32 %v1197_v56 }
 0x71e   :  { %v1194_v58 = vpop.xlane.xlu0 %1193 }
 0x71f   :  { %v1196_v60 = vmul.f32 %v1194_v58, %v2768_v36  ;;  %v2105_v36 = vld [vmem:[%s2915_s16] sm:$0xff]  ;;  %v1983_v58 = vld [vmem:[#allocation11 + $0x60] sm:$0xf] }
 0x720   :  { %1308 = vmatpush.bf16.msrb.mxu1 %v2105_v36 }
 0x721   :  { %v2180_v62 = vpop.eup %2179  ;;  %v1198_v63 = vadd.f32 1e-05, %v1196_v60 }
 0x722   :  { %v1200_v0 = vmul.f32 %v2180_v62, %v1197_v56  ;;  %vm1206_vm11 = vweird.f32 %v2180_v62  ;;  %v1972_v56 = vor.u32 %v2120_v52, %v1969_v53  ;;  %v1935_v52 = vld [vmem:[#allocation11 + $0x8] sm:$0xf]  ;;  %v2113_v53 = vld [vmem:[#allocation11 + $0x18] sm:$0xf0] }
 0x723   :  { %2181 = vrsqrt.f32 %v1198_v63  ;;  %vm1207_vm13 = vmor %vm1205_vm12, %vm1206_vm11  ;;  %vm1215_vm15 = vweird.f32 %v1198_v63 }
 0x724   :  { %v1201_v2 = vmul.f32 %v2180_v62, %v1200_v0  ;;  %1507 = vmatpush.bf16.msra.mxu1 %v2012_v22  ;;  %v2117_v0 = vld [vmem:[#allocation11 + $0x38] sm:$0xf0]  ;;  %v2119_v22 = vld [vmem:[#allocation11 + $0x48] sm:$0xf0] }
 0x726   :  { %v1202_v4 = vmul.f32 0.5, %v1201_v2 }
 0x728   :  { %v1203_v57 = vsub.f32 1.5, %v1202_v4  ;;  %1508 = vmatpush.bf16.msra.mxu1 %v1992_v40  ;;  %v2114_v40 = vld [vmem:[#allocation11 + $0x20] sm:$0xf0] }
 0x729   :  { %v2182_v5 = vpop.eup %2181 }
 0x72a   :  { %v1204_v61 = vmul.f32 %v2180_v62, %v1203_v57  ;;  %v1210_v6 = vmul.f32 %v2182_v5, %v1198_v63  ;;  %vm1216_vm14 = vweird.f32 %v2182_v5  ;;  %v1947_v63 = vld [vmem:[#allocation11 + $0x28] sm:$0xf] }
 0x72b   :  { %vm1217_vm1 = vmor %vm1215_vm15, %vm1216_vm14  ;;  %v1948_v3 = vor.u32 %v2117_v0, %v1947_v63  ;;  %v1346_v63 = vld [vmem:[%s2918_s19] sm:$0x1f] }
 0x72c   :  { %v1208_v8 = vsel %vm1207_vm13, %v2180_v62, %v1204_v61  ;;  %v1211_v9 = vmul.f32 %v2182_v5, %v1210_v6  ;;  %v1984_v62 = vor.u32 %v2124_v59, %v1983_v58  ;;  %1509 = vmatpush.bf16.msra.mxu1 %v1972_v56  ;;  %v1352_v0 = vperm.slane %v1346_v63, 4 }
 0x72d   :  { %v1219_v11 = vmul.f32 %v1208_v8, %v1185_v46  ;;  %v1967_v46 = vld [vmem:[#allocation11 + $0x50] sm:$0xf] }
 0x72e   :  { %v1212_v12 = vmul.f32 0.5, %v1211_v9  ;;  %v1968_v50 = vor.u32 %v2122_v47, %v1967_v46  ;;  %1548 = vmatpush.bf16.msra.mxu3 %v1984_v62  ;;  %v2123_v46 = vld [vmem:[#allocation11 + $0x68] sm:$0xf0] }
 0x72f   :  { %v1224_v13 = vmul.f32 %v2154_v7, %v1219_v11  ;;  %v1976_v47 = vor.u32 %v2123_v46, %v1975_v45 }
 0x730   :  { %v1213_v17 = vsub.f32 1.5, %v1212_v12  ;;  %1496 = vmatpush.bf16.msrb.mxu0 %v1968_v50 }
 0x731   :  { %v1229_v21 = vadd.f32 %v2875_v10, %v1224_v13 }
 0x732   :  { %v1214_v26 = vmul.f32 %v2182_v5, %v1213_v17  ;;  %v1949_v17 = vld [vmem:[#allocation11 + $0x3c] sm:$0xf0] }
 0x733   :  { %v1231_v32 = vsel %vm403_vm2, %v1229_v21, 0.0  ;;  %v1952_v19 = vor.u32 %v2115_v16, %v1949_v17  ;;  %v1963_v21 = vld [vmem:[#allocation11 + $0x38] sm:$0xf] }
 0x734   :  { %v1232_v38 = vrot.slane %v1231_v32, 4  ;;  %v1218_v39 = vsel %vm1217_vm1, %v2182_v5, %v1214_v26  ;;  %1497 = vmatpush.bf16.msrb.mxu0 %v1948_v3  ;;  %v1964_v24 = vor.u32 %v2119_v22, %v1963_v21  ;;  %v2112_v26 = vld [vmem:[#allocation11 + $0x10] sm:$0xf0] }
 0x735   :  { %v1220_v43 = vmul.f32 %v1218_v39, %v2847_v51  ;;  %v1980_v51 = vor.u32 %v2121_v54, %v1977_v37  ;;  %1510 = vmatpush.bf16.msra.mxu1 %v1952_v19  ;;  %v1928_v27 = vor.u32 %v2112_v26, %v1927_v25  ;;  %v1943_v39 = vld [vmem:[#allocation11 + $0x10] sm:$0xf]  ;;  %v1936_v54 = vor.u32 %v2113_v53, %v1935_v52 }
 0x736   :  { %v1233_v48 = vadd.f32 %v1232_v38, %v1231_v32  ;;  %1549 = vmatpush.bf16.msra.mxu3 %v1964_v24  ;;  %v2133_v32 = vld [vmem:[#allocation11 + $0xb8] sm:$0xf0]  ;;  %v1940_v38 = vor.u32 %v2111_v33, %v1937_v34  ;;  %v1944_v41 = vor.u32 %v2114_v40, %v1943_v39 }
 0x737   :  { %v1225_v55 = vmul.f32 %v2154_v7, %v1220_v43  ;;  %1535 = vmatpush.bf16.msrb.mxu2 %v1980_v51  ;;  %v2016_v35 = vor.u32 %v2133_v32, %v2015_v30  ;;  %v2128_v43 = vld [vmem:[#allocation11 + $0x90] sm:$0xf0] }
 0x738   :  { %v1234_v60 = vrot.slane %v1233_v48, 2  ;;  %1498 = vmatpush.bf16.msrb.mxu0 %v1928_v27  ;;  %v1996_v44 = vor.u32 %v2128_v43, %v1995_v42 }
 0x739   :  { %v1230_v1 = vadd.f32 %v2875_v10, %v1225_v55  ;;  %1511 = vmatpush.bf16.msra.mxu1 %v1932_v31  ;;  %v2156_v55 = vld [vmem:[%s2916_s17] ss:$0 sm:$0xff]  ;;  %s2374_s17 = smov [#allocation13]  }
 0x73a   :  { %v1235_v2 = vadd.f32 %v1234_v60, %v1233_v48  ;;  %1550 = vmatpush.bf16.msra.mxu3 %v1944_v41  ;;  %v1955_v48 = vld [vmem:[#allocation11 + $0x30] sm:$0xf]  ;;  %s1576_s19 = sshll.u32 %s2374_s17, 4  ;;  %s1577_s19 = int_to_ptr.vmem [resolvable:$true] %s1576_s19 }
 0x73b   :  { %v1238_v4 = vsel %vm403_vm2, %v1230_v1, 0.0  ;;  %1536 = vmatpush.bf16.msrb.mxu2 %v1960_v23  ;;  %v1956_v50 = vor.u32 %v2118_v49, %v1955_v48 }
 0x73c   :  { %v1239_v57 = vrot.slane %v1238_v4, 4  ;;  %v1236_v5 = vrot.slane %v1235_v2, 1  ;;  %1520 = vmatpush.bf16.msra.mxu0 %v2016_v35 }
 0x73e   :  { %v1240_v36 = vadd.f32 %v1239_v57, %v1238_v4  ;;  %v1237_v7 = vadd.f32 %v1236_v5, %v1235_v2  ;;  %v1351_v5 = vperm.slane %v1346_v63, 3 }
 0x73f   :  { %1537 = vmatpush.bf16.msrb.mxu2 %v1940_v38 }
 0x740   :  { %v1241_v61 = vrot.slane %v1240_v36, 2  ;;  %v1245_v11 = vpack.c.bf16 %v1237_v7, %v1237_v7  ;;  %1521 = vmatpush.bf16.msra.mxu0 %v1996_v44  ;;  %v1348_v7 = vperm.slane %v1346_v63, 0 }
 0x742   :  { %v1242_v6 = vadd.f32 %v1241_v61, %v1240_v36  ;;  %v1263_v10 = vunpack.c.l.b16 %v1245_v11  ;;  %v1349_v36 = vperm.slane %v1346_v63, 1 }
 0x744   :  { %v1243_v8 = vrot.slane %v1242_v6, 1  ;;  %1522 = vmatpush.bf16.msra.mxu0 %v1976_v47 }
 0x746   :  { %v1244_v9 = vadd.f32 %v1243_v8, %v1242_v6  ;;  %v1350_v6 = vperm.slane %v1346_v63, 2 }
 0x748   :  { %v1246_v12 = vpack.c.bf16 %v1244_v9, %v1244_v9  ;;  %1523 = vmatpush.bf16.msra.mxu0 %v1956_v50 }
 0x74a   :  { %v1264_v13 = vunpack.c.l.b16 %v1246_v12 }
 0x74c   :  { %v1266_v14 = vsel %vm1265_vm3, %v1264_v13, %v1263_v10  ;;  %1524 = vmatpush.bf16.msra.mxu0 %v1936_v54 }
 0x74d   :  { %v1267_v15 = vpack.c.b16 %v1266_v14, %v1266_v14 }
 0x74f   :  { %1924 = vmatmul.msk.bf16.vlgmr.msrb.gmra.mxu1 %vm403_vm2, %v1267_v15 }
 0x7cc   :  { %v1310_v56 = vpop.f32.mrf.mxu1 }
 0x7cd   :  { %v1311_v37 = vadd.f32 %v2156_v55, %v1310_v56 }
 0x7cf   :  { %v1314_v58 = vmax.f32 %v1311_v37, 0.0 }
 0x7d1   :  { %v1315_v59 = vpack.c.bf16 %v1314_v58, %v1314_v58 }
 0x7d3   :  { %2025 = vmatmul.msk.bf16.vlgmr.msrb.gmra.mxu0 %vm403_vm2, %v1315_v59  ;;  %2026 = vmatmul.msk.bf16.vlgmr.msra.gmra.mxu1 %vm403_vm2, %v1315_v59 }
 0x7d4   :  { %2028 = vmatmul.msk.bf16.vlgmr.msrb.gmra.mxu2 %vm403_vm2, %v1315_v59  ;;  %2029 = vmatmul.msk.bf16.vlgmr.msra.gmra.mxu3 %vm403_vm2, %v1315_v59  ;;  %v1312_v60 = vpop.f32.mrf.mxu1 }
 0x7e3   :  { %2027 = vmatmul.msk.bf16.vlgmr.msra.gmra.mxu0 %vm403_vm2, %v1315_v59  ;;  %vm1563_vm2 = vcmask 1041408  }
 0x850   :  { %v1500_v51 = vpop.f32.mrf.mxu0  ;;  %v1513_v62 = vpop.f32.mrf.mxu1 }
 0x851   :  { %v1514_v61 = vadd.f32 %v1513_v62, %v1349_v36  ;;  %v1501_v14 = vadd.f32 %v1500_v51, %v1348_v7 }
 0x853   :  { %v1560_v10 = vrot.slane %v1514_v61, 6 }
 0x855   :  { %v1564_v17 = vsel %vm1563_vm2, %v1501_v14, %v1560_v10 }
 0x857   :  { %v1539_v1 = vpop.f32.mrf.mxu2  ;;  %v1552_v2 = vpop.f32.mrf.mxu3 }
 0x858   :  { %v1553_v3 = vadd.f32 %v1552_v2, %v1352_v0  ;;  %v1502_v4 = vpop.f32.mrf.mxu0  ;;  %v1515_v57 = vpop.f32.mrf.mxu1  ;;  %v1540_v8 = vadd.f32 %v1539_v1, %v1351_v5 }
 0x85a   :  { %1570 = vst [vmem:[#allocation13 + $0x8] sm:$0x3] %v1553_v3  ;;  %v1562_v15 = vrot.slane %v1540_v8, 2 }
 0x85f   :  { %v1541_v9 = vpop.f32.mrf.mxu2  ;;  %v1554_v11 = vpop.f32.mrf.mxu3 }
 0x860   :  { %v1526_v12 = vpop.f32.mrf.mxu0 }
 0x861   :  { %v1527_v13 = vadd.f32 %v1526_v12, %v1350_v6 }
 0x863   :  { %v1561_v16 = vrot.slane %v1527_v13, 4 }
 0x865   :  { %v1566_v18 = vsel %vm1565_vm4, %v1561_v16, %v1562_v15 }
 0x866   :  { %v1567_v19 = vsel %vm190_vm0, %v1564_v17, %v1566_v18 }
 0x867   :  { %1569 = vst [vmem:[#allocation13] sm:$0xff] %v1567_v19 }
 0x868   :  { %v1528_v20 = vpop.f32.mrf.mxu0  ;;  %1581 = dma.vmem_to_hbm [thread:$0]  %s1577_s19, 160, %s1579_s30, [#allocation4]  }
 0x869   :  { %2359 = dma.done.wait [#allocation4], 160  }
 0x86a   :  { %2360 = vsyncadd [#allocation4], 4294967136 }
 0x86b   :  { %1586 = vsyncpa [#allocation3], 1 }
 0x86c   :  { %1587 = vsyncpa [#allocation6], 1 }
 0x86d   :  { %1588 = vsyncpa [#allocation9], 1 }
 0x86e   :  { %1589 = vsyncpa [#allocation12], 1 }
 0x86f   :  { %1590 = vsyncpa [#allocation4], 1 }

</bundles_post_ra>
